<compile_context>
chip_gen: v6e
topology: v6e:2x2x1
jax: 0.10.0
libtpu: 0.0.40
codegen_flags: <defaults>
</compile_context>

<pallas_src>
import jax
import jax.numpy as jnp
from jax.experimental import pallas as pl
from jax.experimental.pallas import tpu as pltpu


# ----------------------------------------------------------------------------
# Fused decoder-step kernel
# ----------------------------------------------------------------------------
def make_decoder_kernel(n_layers, emb_dim, hid_dim, batch):
    """Kernel for a fixed (n_layers, E, H, B) configuration.

    Ref layout (scalar prefetch, inputs, outputs, scratch):
      ids_ref  : (B,) int32 SMEM          token ids (scalar prefetch)
      emb_hbm  : (V, E) f32 HBM (pl.ANY)  embedding table, row-gathered by DMA
      h_ref    : (L, B, H) f32            previous hidden state
      c_ref    : (L, B, H) f32            previous cell state
      per layer: wx (in_dim, 4H) bf16, wh (H, 4H) bf16, b (1, 4H) f32
      fc_w_ref : (H, TILE_V) bf16         vocab-tiled projection weight
      fc_b_ref : (1, TILE_V) f32
      pred_ref : (B, TILE_V) f32          output logits tile
      h_out_ref: (L, B, H) f32            new hidden state
      c_out_ref: (L, B, H) f32            new cell state
      x_emb    : (B, E) f32 VMEM scratch  gathered embedding rows
      x_fin    : (B, H) bf16 VMEM scratch final-layer hidden, reused per tile
      sem      : DMA semaphores (B,)
    Gate column order inside every 4H block is [i, f, o, g] (permuted at init)
    so sigmoid runs on one contiguous gates[:, :3H] slice and tanh on the rest.
    """
    H = hid_dim
    B = batch

    def kernel(ids_ref, emb_hbm, h_ref, c_ref, *rest):
        lstm_refs = rest[: 3 * n_layers]
        fc_w_ref = rest[3 * n_layers]
        fc_b_ref = rest[3 * n_layers + 1]
        pred_ref = rest[3 * n_layers + 2]
        h_out_ref = rest[3 * n_layers + 3]
        c_out_ref = rest[3 * n_layers + 4]
        x_emb = rest[3 * n_layers + 5]
        x_fin = rest[3 * n_layers + 6]
        sem = rest[3 * n_layers + 7]

        j = pl.program_id(0)

        # ---- grid step 0: embedding gather + full LSTM stack ----------------
        @pl.when(j == 0)
        def _():
            # Embedding gather: DMA only the B needed rows HBM -> VMEM.
            copies = []
            for b in range(B):
                cp = pltpu.make_async_copy(
                    emb_hbm.at[pl.ds(ids_ref[b], 1)],   # (1, E) row in HBM
                    x_emb.at[pl.ds(b, 1)],              # (1, E) dst in VMEM
                    sem.at[b])
                cp.start()
                copies.append(cp)
            for cp in copies:
                cp.wait()
            # TODO(synk): dropout implemented as inference-mode identity (no RNG mask).

            x = x_emb[...].astype(jnp.bfloat16)         # (B, E)
            for layer in range(n_layers):               # unrolled at trace time
                wx_ref = lstm_refs[3 * layer]
                wh_ref = lstm_refs[3 * layer + 1]
                b_ref = lstm_refs[3 * layer + 2]
                h_prev = h_ref[layer]                    # (B, H) f32
                c_prev = c_ref[layer]                    # (B, H) f32

                # gates = x @ Wx + h @ Wh + b : two bf16 MXU pushes, f32 acc,
                # no lane-axis concatenation.
                gates = (jnp.dot(x, wx_ref[...],
                                 preferred_element_type=jnp.float32)
                         + jnp.dot(h_prev.astype(jnp.bfloat16), wh_ref[...],
                                   preferred_element_type=jnp.float32)
                         + b_ref[...])                   # (B, 4H) f32

                # gate order [i, f, o, g]: one contiguous sigmoid, one tanh.
                sig = jax.nn.sigmoid(gates[:, : 3 * H])
                g_g = jnp.tanh(gates[:, 3 * H:])
                i_g = sig[:, :H]
                f_g = sig[:, H: 2 * H]
                o_g = sig[:, 2 * H: 3 * H]

                c_new = f_g * c_prev + i_g * g_g         # f32 elementwise
                h_new = o_g * jnp.tanh(c_new)

                # per-layer stores: no epilogue concat / relayout
                h_out_ref[layer] = h_new
                c_out_ref[layer] = c_new
                x = h_new.astype(jnp.bfloat16)

            x_fin[...] = x                               # persists across grid

        # ---- every grid step: one vocab tile of the final projection --------
        pred_ref[...] = (
            jnp.dot(x_fin[...], fc_w_ref[...],
                    preferred_element_type=jnp.float32)
            + fc_b_ref[...]).astype(pred_ref.dtype)

    return kernel


# ----------------------------------------------------------------------------
# Wrapper (one pallas_call; jit once at the top level)
# ----------------------------------------------------------------------------
def decoder_forward(params, input_ids, hidden, cell, *, tile_v=256):
    """
    input_ids: (B,) int32 token ids
    hidden, cell: (n_layers, B, H) float32
    returns: prediction (B, V) f32, hidden (n_layers, B, H), cell (n_layers, B, H)
    """
    n_layers, B, H = hidden.shape
    V, E = params["embedding"].shape
    if V % tile_v != 0:
        tile_v = V
    num_v_tiles = V // tile_v

    ids = input_ids.astype(jnp.int32).reshape(B)

    lstm_flat = []
    for wx, wh, b in params["lstm"]:
        lstm_flat += [wx, wh, b]

    # Constant index_maps -> these arrays are DMA'd once and stay VMEM-resident
    # across the vocab grid.  (num_scalar_prefetch=1 => index_maps get ids_ref.)
    def const3(j, ids_ref):
        return (0, 0, 0)

    def const2(j, ids_ref):
        return (0, 0)

    in_specs = [
        pl.BlockSpec(memory_space=pl.ANY),                    # embedding (HBM)
        pl.BlockSpec((n_layers, B, H), const3),               # hidden
        pl.BlockSpec((n_layers, B, H), const3),               # cell
    ]
    for wx, wh, b in params["lstm"]:
        in_specs += [
            pl.BlockSpec(wx.shape, const2),
            pl.BlockSpec(wh.shape, const2),
            pl.BlockSpec(b.shape, const2),
        ]
    in_specs += [
        pl.BlockSpec((H, tile_v), lambda j, ids_ref: (0, j)),  # fc_w tile
        pl.BlockSpec((1, tile_v), lambda j, ids_ref: (0, j)),  # fc_b tile
    ]

    out_specs = [
        pl.BlockSpec((B, tile_v), lambda j, ids_ref: (0, j)),  # pred tile
        pl.BlockSpec((n_layers, B, H), const3),                # new hidden
        pl.BlockSpec((n_layers, B, H), const3),                # new cell
    ]

    grid_spec = pltpu.PrefetchScalarGridSpec(
        num_scalar_prefetch=1,
        grid=(num_v_tiles,),
        in_specs=in_specs,
        out_specs=out_specs,
        scratch_shapes=[
            pltpu.VMEM((B, E), jnp.float32),      # gathered embedding rows
            pltpu.VMEM((B, H), jnp.bfloat16),     # final-layer hidden for FC
            pltpu.SemaphoreType.DMA((B,)),
        ],
    )

    # Advisory cost estimate so XLA can overlap this call with surrounding
    # decode-loop ops (sampling, host transfers).
    flops = 0
    for layer in range(n_layers):
        in_dim = E if layer == 0 else H
        flops += 2 * B * (in_dim + H) * 4 * H
    flops += 2 * B * H * V
    transcendentals = 5 * B * H * n_layers
    bytes_accessed = (
        B * E * 4                                                   # emb rows
        + sum(int(a.size) * a.dtype.itemsize for a in lstm_flat)    # lstm wts
        + int(params["fc_w"].size) * 2 + V * 4                      # fc
        + 4 * n_layers * B * H * 4                                  # h/c in+out
        + B * V * 4)                                                # logits
    cost = pl.CostEstimate(flops=flops, transcendentals=transcendentals,
                           bytes_accessed=bytes_accessed)

    kernel = make_decoder_kernel(n_layers, E, H, B)

    pred, h_new, c_new = pl.pallas_call(
        kernel,
        grid_spec=grid_spec,
        out_shape=(
            jax.ShapeDtypeStruct((B, V), jnp.float32),
            jax.ShapeDtypeStruct((n_layers, B, H), jnp.float32),
            jax.ShapeDtypeStruct((n_layers, B, H), jnp.float32),
        ),
        compiler_params=pltpu.CompilerParams(
            # "arbitrary": grid step 0 computes the LSTM stack into scratch
            # consumed by every vocab tile, so this axis must not be sharded
            # across cores as-is.
            # TODO(synk): for v7x megacore, recompute the LSTM on each core's
            # first tile (or split V statically) to mark this axis "parallel".
            dimension_semantics=("arbitrary",),
            vmem_limit_bytes=32 * 1024 * 1024,
        ),
        cost_estimate=cost,
    )(ids, params["embedding"], hidden, cell,
      *lstm_flat, params["fc_w"], params["fc_b"])

    return pred, h_new, c_new


# ----------------------------------------------------------------------------
# Deterministic parameter init (shapes follow the module's __init__).
# Per layer we store W_x = W_ih^T (in_dim, 4H) and W_h = W_hh^T (H, 4H) in
# bf16, with gate columns permuted from PyTorch's [i, f, g, o] to [i, f, o, g],
# plus a single f32 bias row = (b_ih + b_hh) with the same permutation.
# The embedding table stays f32 (only B rows are ever read per step).
# ----------------------------------------------------------------------------
def init_params(key, *, vocab_size, emb_dim, hid_dim, n_layers):
    H = hid_dim
    keys = jax.random.split(key, 1 + 4 * n_layers + 2)
    ki = iter(keys)

    def unif(k, shape, scale):
        return jax.random.uniform(k, shape, jnp.float32, -scale, scale)

    # permutation of the 4H gate axis: [i, f, g, o] -> [i, f, o, g]
    perm = jnp.concatenate([jnp.arange(0, H), jnp.arange(H, 2 * H),
                            jnp.arange(3 * H, 4 * H), jnp.arange(2 * H, 3 * H)])

    params = {}
    params["embedding"] = jax.random.normal(next(ki), (vocab_size, emb_dim),
                                            jnp.float32)

    k_scale = 1.0 / float(H) ** 0.5
    lstm = []
    for layer in range(n_layers):
        in_dim = emb_dim if layer == 0 else H
        w_ih = unif(next(ki), (4 * H, in_dim), k_scale)
        w_hh = unif(next(ki), (4 * H, H), k_scale)
        b_ih = unif(next(ki), (4 * H,), k_scale)
        b_hh = unif(next(ki), (4 * H,), k_scale)
        wx = w_ih[perm].T.astype(jnp.bfloat16)          # (in_dim, 4H)
        wh = w_hh[perm].T.astype(jnp.bfloat16)          # (H, 4H)
        bias = (b_ih + b_hh)[perm].reshape(1, 4 * H)    # f32
        lstm.append((wx, wh, bias))
    params["lstm"] = lstm

    params["fc_w"] = unif(next(ki), (H, vocab_size), k_scale).astype(jnp.bfloat16)
    params["fc_b"] = unif(next(ki), (1, vocab_size), k_scale)
    return params


# ----------------------------------------------------------------------------
# Pure-JAX reference (same stored weights, f32 math) for a correctness check
# ----------------------------------------------------------------------------
def decoder_reference(params, input_ids, hidden, cell):
    H = hidden.shape[-1]
    x = params["embedding"][input_ids]
    new_h, new_c = [], []
    for layer, (wx, wh, b) in enumerate(params["lstm"]):
        gates = (x @ wx.astype(jnp.float32)
                 + hidden[layer] @ wh.astype(jnp.float32) + b)
        i_g = jax.nn.sigmoid(gates[:, :H])
        f_g = jax.nn.sigmoid(gates[:, H: 2 * H])
        o_g = jax.nn.sigmoid(gates[:, 2 * H: 3 * H])
        g_g = jnp.tanh(gates[:, 3 * H:])
        c = f_g * cell[layer] + i_g * g_g
        h = o_g * jnp.tanh(c)
        new_h.append(h)
        new_c.append(c)
        x = h
    pred = x @ params["fc_w"].astype(jnp.float32) + params["fc_b"]
    return pred, jnp.stack(new_h), jnp.stack(new_c)


if __name__ == "__main__":
    BATCH = 8
    EMB_DIM = 128
    HID_DIM = 128       # multiple of 128 -> every gate slice / h / c is a vreg
    VOCAB = 512
    N_LAYERS = 2

    key = jax.random.PRNGKey(0)
    k_param, k_in, k_h, k_c = jax.random.split(key, 4)

    params = init_params(k_param, vocab_size=VOCAB, emb_dim=EMB_DIM,
                         hid_dim=HID_DIM, n_layers=N_LAYERS)

    input_ids = jax.random.randint(k_in, (BATCH,), 0, VOCAB, dtype=jnp.int32)
    hidden = jax.random.normal(k_h, (N_LAYERS, BATCH, HID_DIM), jnp.float32)
    cell = jax.random.normal(k_c, (N_LAYERS, BATCH, HID_DIM), jnp.float32)

    decoder_step = jax.jit(decoder_forward)
    prediction, new_hidden, new_cell = decoder_step(params, input_ids, hidden, cell)
    jax.block_until_ready((prediction, new_hidden, new_cell))

    assert prediction.shape == (BATCH, VOCAB)
    assert new_hidden.shape == (N_LAYERS, BATCH, HID_DIM)
    assert new_cell.shape == (N_LAYERS, BATCH, HID_DIM)

    # Correctness vs f32 reference built from the same (bf16-quantized) weights;
    # tolerance loosened for bf16 activation / MXU rounding.
    p_ref, h_ref, c_ref = decoder_reference(params, input_ids, hidden, cell)
    assert jnp.allclose(prediction, p_ref, atol=5e-2, rtol=5e-2)
    assert jnp.allclose(new_hidden, h_ref, atol=5e-2, rtol=5e-2)
    assert jnp.allclose(new_cell, c_ref, atol=5e-2, rtol=5e-2)

    print("KERNEL_OK")
</pallas_src>

<mosaic_0001>
module attributes {stable_mosaic.version = 11 : i64} {
  func.func @kernel(%arg0: i32, %arg1: memref<8xi32, #tpu.memory_space<smem>>, %arg2: memref<512x128xf32, #tpu.memory_space<any>>, %arg3: memref<2x8x128xf32, #tpu.memory_space<vmem>>, %arg4: memref<2x8x128xf32, #tpu.memory_space<vmem>>, %arg5: memref<128x512xbf16, #tpu.memory_space<vmem>>, %arg6: memref<128x512xbf16, #tpu.memory_space<vmem>>, %arg7: memref<1x512xf32, #tpu.memory_space<vmem>>, %arg8: memref<128x512xbf16, #tpu.memory_space<vmem>>, %arg9: memref<128x512xbf16, #tpu.memory_space<vmem>>, %arg10: memref<1x512xf32, #tpu.memory_space<vmem>>, %arg11: memref<128x256xbf16, #tpu.memory_space<vmem>>, %arg12: memref<1x256xf32, #tpu.memory_space<vmem>>, %arg13: memref<8x256xf32, #tpu.memory_space<vmem>>, %arg14: memref<2x8x128xf32, #tpu.memory_space<vmem>>, %arg15: memref<2x8x128xf32, #tpu.memory_space<vmem>>, %arg16: memref<8x128xf32, #tpu.memory_space<vmem>>, %arg17: memref<8x128xbf16, #tpu.memory_space<vmem>>, %arg18: memref<8x!tpu.dma_semaphore, #tpu.memory_space<semaphore_mem>>) attributes {dimension_semantics = [#tpu.dimension_semantics<arbitrary>], iteration_bounds = array<i64: 2>, scalar_prefetch = 1 : i64, scratch_operands = 3 : i64, tpu.core_type = #tpu.core_type<tc>, window_params = [{}, {pipeline_mode = #tpu.pipeline_mode<synchronous>, transform_indices = @transform_1, window_bounds = array<i64: 2, 8, 128>}, {pipeline_mode = #tpu.pipeline_mode<synchronous>, transform_indices = @transform_2, window_bounds = array<i64: 2, 8, 128>}, {pipeline_mode = #tpu.pipeline_mode<synchronous>, transform_indices = @transform_3, window_bounds = array<i64: 128, 512>}, {pipeline_mode = #tpu.pipeline_mode<synchronous>, transform_indices = @transform_4, window_bounds = array<i64: 128, 512>}, {pipeline_mode = #tpu.pipeline_mode<synchronous>, transform_indices = @transform_5, window_bounds = array<i64: 1, 512>}, {pipeline_mode = #tpu.pipeline_mode<synchronous>, transform_indices = @transform_6, window_bounds = array<i64: 128, 512>}, {pipeline_mode = #tpu.pipeline_mode<synchronous>, transform_indices = @transform_7, window_bounds = array<i64: 128, 512>}, {pipeline_mode = #tpu.pipeline_mode<synchronous>, transform_indices = @transform_8, window_bounds = array<i64: 1, 512>}, {transform_indices = @transform_9, window_bounds = array<i64: 128, 256>}, {transform_indices = @transform_10, window_bounds = array<i64: 1, 256>}, {transform_indices = @transform_11, window_bounds = array<i64: 8, 256>}, {pipeline_mode = #tpu.pipeline_mode<synchronous>, transform_indices = @transform_12, window_bounds = array<i64: 2, 8, 128>}, {pipeline_mode = #tpu.pipeline_mode<synchronous>, transform_indices = @transform_13, window_bounds = array<i64: 2, 8, 128>}]} {
    %c0_i32 = arith.constant 0 : i32
    %0 = arith.cmpi eq, %arg0, %c0_i32 : i32
    %1 = arith.extui %0 : i1 to i32
    %c0_i32_0 = arith.constant 0 : i32
    %2 = arith.cmpi ne, %1, %c0_i32_0 : i32
    scf.if %2 {
      %c0_8 = arith.constant 0 : index
      %10 = memref.load %arg1[%c0_8] : memref<8xi32, #tpu.memory_space<smem>>
      %c0_i32_9 = arith.constant 0 : i32
      %c0_i32_10 = arith.constant 0 : i32
      %11 = tpu.memref_slice %arg2[%10, %c0_i32_10] : memref<512x128xf32, #tpu.memory_space<any>> -> memref<1x128xf32, #tpu.memory_space<any>>
      %c0_i32_11 = arith.constant 0 : i32
      %c0_i32_12 = arith.constant 0 : i32
      %12 = tpu.memref_slice %arg16[%c0_i32_11, %c0_i32_12] : memref<8x128xf32, #tpu.memory_space<vmem>> -> memref<1x128xf32, #tpu.memory_space<vmem>>
      %13 = tpu.memref_slice %arg18[%c0_i32_9] : memref<8x!tpu.dma_semaphore, #tpu.memory_space<semaphore_mem>> -> memref<1x!tpu.dma_semaphore, #tpu.memory_space<semaphore_mem>>
      %14 = tpu.memref_squeeze %13 : memref<1x!tpu.dma_semaphore, #tpu.memory_space<semaphore_mem>> -> memref<!tpu.dma_semaphore, #tpu.memory_space<semaphore_mem>>
      tpu.enqueue_dma source(%11 : memref<1x128xf32, #tpu.memory_space<any>>) target(%12 : memref<1x128xf32, #tpu.memory_space<vmem>>) target_semaphore(%14 : memref<!tpu.dma_semaphore, #tpu.memory_space<semaphore_mem>>)
      %c1 = arith.constant 1 : index
      %15 = memref.load %arg1[%c1] : memref<8xi32, #tpu.memory_space<smem>>
      %c1_i32 = arith.constant 1 : i32
      %c0_i32_13 = arith.constant 0 : i32
      %16 = tpu.memref_slice %arg2[%15, %c0_i32_13] : memref<512x128xf32, #tpu.memory_space<any>> -> memref<1x128xf32, #tpu.memory_space<any>>
      %c1_i32_14 = arith.constant 1 : i32
      %c0_i32_15 = arith.constant 0 : i32
      %17 = tpu.memref_slice %arg16[%c1_i32_14, %c0_i32_15] : memref<8x128xf32, #tpu.memory_space<vmem>> -> memref<1x128xf32, #tpu.memory_space<vmem>>
      %18 = tpu.memref_slice %arg18[%c1_i32] : memref<8x!tpu.dma_semaphore, #tpu.memory_space<semaphore_mem>> -> memref<1x!tpu.dma_semaphore, #tpu.memory_space<semaphore_mem>>
      %19 = tpu.memref_squeeze %18 : memref<1x!tpu.dma_semaphore, #tpu.memory_space<semaphore_mem>> -> memref<!tpu.dma_semaphore, #tpu.memory_space<semaphore_mem>>
      tpu.enqueue_dma source(%16 : memref<1x128xf32, #tpu.memory_space<any>>) target(%17 : memref<1x128xf32, #tpu.memory_space<vmem>>) target_semaphore(%19 : memref<!tpu.dma_semaphore, #tpu.memory_space<semaphore_mem>>)
      %c2 = arith.constant 2 : index
      %20 = memref.load %arg1[%c2] : memref<8xi32, #tpu.memory_space<smem>>
      %c2_i32 = arith.constant 2 : i32
      %c0_i32_16 = arith.constant 0 : i32
      %21 = tpu.memref_slice %arg2[%20, %c0_i32_16] : memref<512x128xf32, #tpu.memory_space<any>> -> memref<1x128xf32, #tpu.memory_space<any>>
      %c2_i32_17 = arith.constant 2 : i32
      %c0_i32_18 = arith.constant 0 : i32
      %22 = tpu.memref_slice %arg16[%c2_i32_17, %c0_i32_18] : memref<8x128xf32, #tpu.memory_space<vmem>> -> memref<1x128xf32, #tpu.memory_space<vmem>>
      %23 = tpu.memref_slice %arg18[%c2_i32] : memref<8x!tpu.dma_semaphore, #tpu.memory_space<semaphore_mem>> -> memref<1x!tpu.dma_semaphore, #tpu.memory_space<semaphore_mem>>
      %24 = tpu.memref_squeeze %23 : memref<1x!tpu.dma_semaphore, #tpu.memory_space<semaphore_mem>> -> memref<!tpu.dma_semaphore, #tpu.memory_space<semaphore_mem>>
      tpu.enqueue_dma source(%21 : memref<1x128xf32, #tpu.memory_space<any>>) target(%22 : memref<1x128xf32, #tpu.memory_space<vmem>>) target_semaphore(%24 : memref<!tpu.dma_semaphore, #tpu.memory_space<semaphore_mem>>)
      %c3 = arith.constant 3 : index
      %25 = memref.load %arg1[%c3] : memref<8xi32, #tpu.memory_space<smem>>
      %c3_i32 = arith.constant 3 : i32
      %c0_i32_19 = arith.constant 0 : i32
      %26 = tpu.memref_slice %arg2[%25, %c0_i32_19] : memref<512x128xf32, #tpu.memory_space<any>> -> memref<1x128xf32, #tpu.memory_space<any>>
      %c3_i32_20 = arith.constant 3 : i32
      %c0_i32_21 = arith.constant 0 : i32
      %27 = tpu.memref_slice %arg16[%c3_i32_20, %c0_i32_21] : memref<8x128xf32, #tpu.memory_space<vmem>> -> memref<1x128xf32, #tpu.memory_space<vmem>>
      %28 = tpu.memref_slice %arg18[%c3_i32] : memref<8x!tpu.dma_semaphore, #tpu.memory_space<semaphore_mem>> -> memref<1x!tpu.dma_semaphore, #tpu.memory_space<semaphore_mem>>
      %29 = tpu.memref_squeeze %28 : memref<1x!tpu.dma_semaphore, #tpu.memory_space<semaphore_mem>> -> memref<!tpu.dma_semaphore, #tpu.memory_space<semaphore_mem>>
      tpu.enqueue_dma source(%26 : memref<1x128xf32, #tpu.memory_space<any>>) target(%27 : memref<1x128xf32, #tpu.memory_space<vmem>>) target_semaphore(%29 : memref<!tpu.dma_semaphore, #tpu.memory_space<semaphore_mem>>)
      %c4 = arith.constant 4 : index
      %30 = memref.load %arg1[%c4] : memref<8xi32, #tpu.memory_space<smem>>
      %c4_i32 = arith.constant 4 : i32
      %c0_i32_22 = arith.constant 0 : i32
      %31 = tpu.memref_slice %arg2[%30, %c0_i32_22] : memref<512x128xf32, #tpu.memory_space<any>> -> memref<1x128xf32, #tpu.memory_space<any>>
      %c4_i32_23 = arith.constant 4 : i32
      %c0_i32_24 = arith.constant 0 : i32
      %32 = tpu.memref_slice %arg16[%c4_i32_23, %c0_i32_24] : memref<8x128xf32, #tpu.memory_space<vmem>> -> memref<1x128xf32, #tpu.memory_space<vmem>>
      %33 = tpu.memref_slice %arg18[%c4_i32] : memref<8x!tpu.dma_semaphore, #tpu.memory_space<semaphore_mem>> -> memref<1x!tpu.dma_semaphore, #tpu.memory_space<semaphore_mem>>
      %34 = tpu.memref_squeeze %33 : memref<1x!tpu.dma_semaphore, #tpu.memory_space<semaphore_mem>> -> memref<!tpu.dma_semaphore, #tpu.memory_space<semaphore_mem>>
      tpu.enqueue_dma source(%31 : memref<1x128xf32, #tpu.memory_space<any>>) target(%32 : memref<1x128xf32, #tpu.memory_space<vmem>>) target_semaphore(%34 : memref<!tpu.dma_semaphore, #tpu.memory_space<semaphore_mem>>)
      %c5 = arith.constant 5 : index
      %35 = memref.load %arg1[%c5] : memref<8xi32, #tpu.memory_space<smem>>
      %c5_i32 = arith.constant 5 : i32
      %c0_i32_25 = arith.constant 0 : i32
      %36 = tpu.memref_slice %arg2[%35, %c0_i32_25] : memref<512x128xf32, #tpu.memory_space<any>> -> memref<1x128xf32, #tpu.memory_space<any>>
      %c5_i32_26 = arith.constant 5 : i32
      %c0_i32_27 = arith.constant 0 : i32
      %37 = tpu.memref_slice %arg16[%c5_i32_26, %c0_i32_27] : memref<8x128xf32, #tpu.memory_space<vmem>> -> memref<1x128xf32, #tpu.memory_space<vmem>>
      %38 = tpu.memref_slice %arg18[%c5_i32] : memref<8x!tpu.dma_semaphore, #tpu.memory_space<semaphore_mem>> -> memref<1x!tpu.dma_semaphore, #tpu.memory_space<semaphore_mem>>
      %39 = tpu.memref_squeeze %38 : memref<1x!tpu.dma_semaphore, #tpu.memory_space<semaphore_mem>> -> memref<!tpu.dma_semaphore, #tpu.memory_space<semaphore_mem>>
      tpu.enqueue_dma source(%36 : memref<1x128xf32, #tpu.memory_space<any>>) target(%37 : memref<1x128xf32, #tpu.memory_space<vmem>>) target_semaphore(%39 : memref<!tpu.dma_semaphore, #tpu.memory_space<semaphore_mem>>)
      %c6 = arith.constant 6 : index
      %40 = memref.load %arg1[%c6] : memref<8xi32, #tpu.memory_space<smem>>
      %c6_i32 = arith.constant 6 : i32
      %c0_i32_28 = arith.constant 0 : i32
      %41 = tpu.memref_slice %arg2[%40, %c0_i32_28] : memref<512x128xf32, #tpu.memory_space<any>> -> memref<1x128xf32, #tpu.memory_space<any>>
      %c6_i32_29 = arith.constant 6 : i32
      %c0_i32_30 = arith.constant 0 : i32
      %42 = tpu.memref_slice %arg16[%c6_i32_29, %c0_i32_30] : memref<8x128xf32, #tpu.memory_space<vmem>> -> memref<1x128xf32, #tpu.memory_space<vmem>>
      %43 = tpu.memref_slice %arg18[%c6_i32] : memref<8x!tpu.dma_semaphore, #tpu.memory_space<semaphore_mem>> -> memref<1x!tpu.dma_semaphore, #tpu.memory_space<semaphore_mem>>
      %44 = tpu.memref_squeeze %43 : memref<1x!tpu.dma_semaphore, #tpu.memory_space<semaphore_mem>> -> memref<!tpu.dma_semaphore, #tpu.memory_space<semaphore_mem>>
      tpu.enqueue_dma source(%41 : memref<1x128xf32, #tpu.memory_space<any>>) target(%42 : memref<1x128xf32, #tpu.memory_space<vmem>>) target_semaphore(%44 : memref<!tpu.dma_semaphore, #tpu.memory_space<semaphore_mem>>)
      %c7 = arith.constant 7 : index
      %45 = memref.load %arg1[%c7] : memref<8xi32, #tpu.memory_space<smem>>
      %c7_i32 = arith.constant 7 : i32
      %c0_i32_31 = arith.constant 0 : i32
      %46 = tpu.memref_slice %arg2[%45, %c0_i32_31] : memref<512x128xf32, #tpu.memory_space<any>> -> memref<1x128xf32, #tpu.memory_space<any>>
      %c7_i32_32 = arith.constant 7 : i32
      %c0_i32_33 = arith.constant 0 : i32
      %47 = tpu.memref_slice %arg16[%c7_i32_32, %c0_i32_33] : memref<8x128xf32, #tpu.memory_space<vmem>> -> memref<1x128xf32, #tpu.memory_space<vmem>>
      %48 = tpu.memref_slice %arg18[%c7_i32] : memref<8x!tpu.dma_semaphore, #tpu.memory_space<semaphore_mem>> -> memref<1x!tpu.dma_semaphore, #tpu.memory_space<semaphore_mem>>
      %49 = tpu.memref_squeeze %48 : memref<1x!tpu.dma_semaphore, #tpu.memory_space<semaphore_mem>> -> memref<!tpu.dma_semaphore, #tpu.memory_space<semaphore_mem>>
      tpu.enqueue_dma source(%46 : memref<1x128xf32, #tpu.memory_space<any>>) target(%47 : memref<1x128xf32, #tpu.memory_space<vmem>>) target_semaphore(%49 : memref<!tpu.dma_semaphore, #tpu.memory_space<semaphore_mem>>)
      %c0_i32_34 = arith.constant 0 : i32
      %c0_i32_35 = arith.constant 0 : i32
      %50 = tpu.memref_slice %arg2[%10, %c0_i32_35] : memref<512x128xf32, #tpu.memory_space<any>> -> memref<1x128xf32, #tpu.memory_space<any>>
      %c0_i32_36 = arith.constant 0 : i32
      %c0_i32_37 = arith.constant 0 : i32
      %51 = tpu.memref_slice %arg16[%c0_i32_36, %c0_i32_37] : memref<8x128xf32, #tpu.memory_space<vmem>> -> memref<1x128xf32, #tpu.memory_space<vmem>>
      %52 = tpu.memref_slice %arg18[%c0_i32_34] : memref<8x!tpu.dma_semaphore, #tpu.memory_space<semaphore_mem>> -> memref<1x!tpu.dma_semaphore, #tpu.memory_space<semaphore_mem>>
      %53 = tpu.memref_squeeze %52 : memref<1x!tpu.dma_semaphore, #tpu.memory_space<semaphore_mem>> -> memref<!tpu.dma_semaphore, #tpu.memory_space<semaphore_mem>>
      tpu.wait_dma2 semaphore(%53 : memref<!tpu.dma_semaphore, #tpu.memory_space<semaphore_mem>>) src(%50 : memref<1x128xf32, #tpu.memory_space<any>>) dst(%51 : memref<1x128xf32, #tpu.memory_space<vmem>>)
      %c1_i32_38 = arith.constant 1 : i32
      %c0_i32_39 = arith.constant 0 : i32
      %54 = tpu.memref_slice %arg2[%15, %c0_i32_39] : memref<512x128xf32, #tpu.memory_space<any>> -> memref<1x128xf32, #tpu.memory_space<any>>
      %c1_i32_40 = arith.constant 1 : i32
      %c0_i32_41 = arith.constant 0 : i32
      %55 = tpu.memref_slice %arg16[%c1_i32_40, %c0_i32_41] : memref<8x128xf32, #tpu.memory_space<vmem>> -> memref<1x128xf32, #tpu.memory_space<vmem>>
      %56 = tpu.memref_slice %arg18[%c1_i32_38] : memref<8x!tpu.dma_semaphore, #tpu.memory_space<semaphore_mem>> -> memref<1x!tpu.dma_semaphore, #tpu.memory_space<semaphore_mem>>
      %57 = tpu.memref_squeeze %56 : memref<1x!tpu.dma_semaphore, #tpu.memory_space<semaphore_mem>> -> memref<!tpu.dma_semaphore, #tpu.memory_space<semaphore_mem>>
      tpu.wait_dma2 semaphore(%57 : memref<!tpu.dma_semaphore, #tpu.memory_space<semaphore_mem>>) src(%54 : memref<1x128xf32, #tpu.memory_space<any>>) dst(%55 : memref<1x128xf32, #tpu.memory_space<vmem>>)
      %c2_i32_42 = arith.constant 2 : i32
      %c0_i32_43 = arith.constant 0 : i32
      %58 = tpu.memref_slice %arg2[%20, %c0_i32_43] : memref<512x128xf32, #tpu.memory_space<any>> -> memref<1x128xf32, #tpu.memory_space<any>>
      %c2_i32_44 = arith.constant 2 : i32
      %c0_i32_45 = arith.constant 0 : i32
      %59 = tpu.memref_slice %arg16[%c2_i32_44, %c0_i32_45] : memref<8x128xf32, #tpu.memory_space<vmem>> -> memref<1x128xf32, #tpu.memory_space<vmem>>
      %60 = tpu.memref_slice %arg18[%c2_i32_42] : memref<8x!tpu.dma_semaphore, #tpu.memory_space<semaphore_mem>> -> memref<1x!tpu.dma_semaphore, #tpu.memory_space<semaphore_mem>>
      %61 = tpu.memref_squeeze %60 : memref<1x!tpu.dma_semaphore, #tpu.memory_space<semaphore_mem>> -> memref<!tpu.dma_semaphore, #tpu.memory_space<semaphore_mem>>
      tpu.wait_dma2 semaphore(%61 : memref<!tpu.dma_semaphore, #tpu.memory_space<semaphore_mem>>) src(%58 : memref<1x128xf32, #tpu.memory_space<any>>) dst(%59 : memref<1x128xf32, #tpu.memory_space<vmem>>)
      %c3_i32_46 = arith.constant 3 : i32
      %c0_i32_47 = arith.constant 0 : i32
      %62 = tpu.memref_slice %arg2[%25, %c0_i32_47] : memref<512x128xf32, #tpu.memory_space<any>> -> memref<1x128xf32, #tpu.memory_space<any>>
      %c3_i32_48 = arith.constant 3 : i32
      %c0_i32_49 = arith.constant 0 : i32
      %63 = tpu.memref_slice %arg16[%c3_i32_48, %c0_i32_49] : memref<8x128xf32, #tpu.memory_space<vmem>> -> memref<1x128xf32, #tpu.memory_space<vmem>>
      %64 = tpu.memref_slice %arg18[%c3_i32_46] : memref<8x!tpu.dma_semaphore, #tpu.memory_space<semaphore_mem>> -> memref<1x!tpu.dma_semaphore, #tpu.memory_space<semaphore_mem>>
      %65 = tpu.memref_squeeze %64 : memref<1x!tpu.dma_semaphore, #tpu.memory_space<semaphore_mem>> -> memref<!tpu.dma_semaphore, #tpu.memory_space<semaphore_mem>>
      tpu.wait_dma2 semaphore(%65 : memref<!tpu.dma_semaphore, #tpu.memory_space<semaphore_mem>>) src(%62 : memref<1x128xf32, #tpu.memory_space<any>>) dst(%63 : memref<1x128xf32, #tpu.memory_space<vmem>>)
      %c4_i32_50 = arith.constant 4 : i32
      %c0_i32_51 = arith.constant 0 : i32
      %66 = tpu.memref_slice %arg2[%30, %c0_i32_51] : memref<512x128xf32, #tpu.memory_space<any>> -> memref<1x128xf32, #tpu.memory_space<any>>
      %c4_i32_52 = arith.constant 4 : i32
      %c0_i32_53 = arith.constant 0 : i32
      %67 = tpu.memref_slice %arg16[%c4_i32_52, %c0_i32_53] : memref<8x128xf32, #tpu.memory_space<vmem>> -> memref<1x128xf32, #tpu.memory_space<vmem>>
      %68 = tpu.memref_slice %arg18[%c4_i32_50] : memref<8x!tpu.dma_semaphore, #tpu.memory_space<semaphore_mem>> -> memref<1x!tpu.dma_semaphore, #tpu.memory_space<semaphore_mem>>
      %69 = tpu.memref_squeeze %68 : memref<1x!tpu.dma_semaphore, #tpu.memory_space<semaphore_mem>> -> memref<!tpu.dma_semaphore, #tpu.memory_space<semaphore_mem>>
      tpu.wait_dma2 semaphore(%69 : memref<!tpu.dma_semaphore, #tpu.memory_space<semaphore_mem>>) src(%66 : memref<1x128xf32, #tpu.memory_space<any>>) dst(%67 : memref<1x128xf32, #tpu.memory_space<vmem>>)
      %c5_i32_54 = arith.constant 5 : i32
      %c0_i32_55 = arith.constant 0 : i32
      %70 = tpu.memref_slice %arg2[%35, %c0_i32_55] : memref<512x128xf32, #tpu.memory_space<any>> -> memref<1x128xf32, #tpu.memory_space<any>>
      %c5_i32_56 = arith.constant 5 : i32
      %c0_i32_57 = arith.constant 0 : i32
      %71 = tpu.memref_slice %arg16[%c5_i32_56, %c0_i32_57] : memref<8x128xf32, #tpu.memory_space<vmem>> -> memref<1x128xf32, #tpu.memory_space<vmem>>
      %72 = tpu.memref_slice %arg18[%c5_i32_54] : memref<8x!tpu.dma_semaphore, #tpu.memory_space<semaphore_mem>> -> memref<1x!tpu.dma_semaphore, #tpu.memory_space<semaphore_mem>>
      %73 = tpu.memref_squeeze %72 : memref<1x!tpu.dma_semaphore, #tpu.memory_space<semaphore_mem>> -> memref<!tpu.dma_semaphore, #tpu.memory_space<semaphore_mem>>
      tpu.wait_dma2 semaphore(%73 : memref<!tpu.dma_semaphore, #tpu.memory_space<semaphore_mem>>) src(%70 : memref<1x128xf32, #tpu.memory_space<any>>) dst(%71 : memref<1x128xf32, #tpu.memory_space<vmem>>)
      %c6_i32_58 = arith.constant 6 : i32
      %c0_i32_59 = arith.constant 0 : i32
      %74 = tpu.memref_slice %arg2[%40, %c0_i32_59] : memref<512x128xf32, #tpu.memory_space<any>> -> memref<1x128xf32, #tpu.memory_space<any>>
      %c6_i32_60 = arith.constant 6 : i32
      %c0_i32_61 = arith.constant 0 : i32
      %75 = tpu.memref_slice %arg16[%c6_i32_60, %c0_i32_61] : memref<8x128xf32, #tpu.memory_space<vmem>> -> memref<1x128xf32, #tpu.memory_space<vmem>>
      %76 = tpu.memref_slice %arg18[%c6_i32_58] : memref<8x!tpu.dma_semaphore, #tpu.memory_space<semaphore_mem>> -> memref<1x!tpu.dma_semaphore, #tpu.memory_space<semaphore_mem>>
      %77 = tpu.memref_squeeze %76 : memref<1x!tpu.dma_semaphore, #tpu.memory_space<semaphore_mem>> -> memref<!tpu.dma_semaphore, #tpu.memory_space<semaphore_mem>>
      tpu.wait_dma2 semaphore(%77 : memref<!tpu.dma_semaphore, #tpu.memory_space<semaphore_mem>>) src(%74 : memref<1x128xf32, #tpu.memory_space<any>>) dst(%75 : memref<1x128xf32, #tpu.memory_space<vmem>>)
      %c7_i32_62 = arith.constant 7 : i32
      %c0_i32_63 = arith.constant 0 : i32
      %78 = tpu.memref_slice %arg2[%45, %c0_i32_63] : memref<512x128xf32, #tpu.memory_space<any>> -> memref<1x128xf32, #tpu.memory_space<any>>
      %c7_i32_64 = arith.constant 7 : i32
      %c0_i32_65 = arith.constant 0 : i32
      %79 = tpu.memref_slice %arg16[%c7_i32_64, %c0_i32_65] : memref<8x128xf32, #tpu.memory_space<vmem>> -> memref<1x128xf32, #tpu.memory_space<vmem>>
      %80 = tpu.memref_slice %arg18[%c7_i32_62] : memref<8x!tpu.dma_semaphore, #tpu.memory_space<semaphore_mem>> -> memref<1x!tpu.dma_semaphore, #tpu.memory_space<semaphore_mem>>
      %81 = tpu.memref_squeeze %80 : memref<1x!tpu.dma_semaphore, #tpu.memory_space<semaphore_mem>> -> memref<!tpu.dma_semaphore, #tpu.memory_space<semaphore_mem>>
      tpu.wait_dma2 semaphore(%81 : memref<!tpu.dma_semaphore, #tpu.memory_space<semaphore_mem>>) src(%78 : memref<1x128xf32, #tpu.memory_space<any>>) dst(%79 : memref<1x128xf32, #tpu.memory_space<vmem>>)
      %c0_66 = arith.constant 0 : index
      %c0_67 = arith.constant 0 : index
      %82 = vector.load %arg16[%c0_66, %c0_67] : memref<8x128xf32, #tpu.memory_space<vmem>>, vector<8x128xf32>
      %83 = arith.truncf %82 : vector<8x128xf32> to vector<8x128xbf16>
      %c0_68 = arith.constant 0 : index
      %c0_69 = arith.constant 0 : index
      %c0_70 = arith.constant 0 : index
      %84 = vector.load %arg3[%c0_68, %c0_69, %c0_70] : memref<2x8x128xf32, #tpu.memory_space<vmem>>, vector<1x8x128xf32>
      %85 = vector.shape_cast %84 : vector<1x8x128xf32> to vector<8x128xf32>
      %c0_71 = arith.constant 0 : index
      %c0_72 = arith.constant 0 : index
      %c0_73 = arith.constant 0 : index
      %86 = vector.load %arg4[%c0_71, %c0_72, %c0_73] : memref<2x8x128xf32, #tpu.memory_space<vmem>>, vector<1x8x128xf32>
      %87 = vector.shape_cast %86 : vector<1x8x128xf32> to vector<8x128xf32>
      %c0_74 = arith.constant 0 : index
      %c0_75 = arith.constant 0 : index
      %88 = vector.load %arg5[%c0_74, %c0_75] : memref<128x512xbf16, #tpu.memory_space<vmem>>, vector<128x512xbf16>
      %cst_76 = arith.constant dense<0.000000e+00> : vector<8x512xf32>
      %89 = tpu.matmul %83, %88, %cst_76 {dimension_numbers = #tpu.dot_dimension_numbers<[1], [0], [0], [1], [0, 0, 1, 1], [], []>} : vector<8x128xbf16>, vector<128x512xbf16>, vector<8x512xf32> -> vector<8x512xf32>
      %90 = arith.truncf %85 : vector<8x128xf32> to vector<8x128xbf16>
      %c0_77 = arith.constant 0 : index
      %c0_78 = arith.constant 0 : index
      %91 = vector.load %arg6[%c0_77, %c0_78] : memref<128x512xbf16, #tpu.memory_space<vmem>>, vector<128x512xbf16>
      %cst_79 = arith.constant dense<0.000000e+00> : vector<8x512xf32>
      %92 = tpu.matmul %90, %91, %cst_79 {dimension_numbers = #tpu.dot_dimension_numbers<[1], [0], [0], [1], [0, 0, 1, 1], [], []>} : vector<8x128xbf16>, vector<128x512xbf16>, vector<8x512xf32> -> vector<8x512xf32>
      %93 = arith.addf %89, %92 : vector<8x512xf32>
      %c0_80 = arith.constant 0 : index
      %c0_81 = arith.constant 0 : index
      %94 = vector.load %arg7[%c0_80, %c0_81] : memref<1x512xf32, #tpu.memory_space<vmem>>, vector<1x512xf32>
      %95 = vector.broadcast %94 : vector<1x512xf32> to vector<8x512xf32>
      %96 = arith.addf %93, %95 : vector<8x512xf32>
      %97 = vector.extract_strided_slice %96 {offsets = [0, 0], sizes = [8, 384], strides = [1, 1]} : vector<8x512xf32> to vector<8x384xf32>
      %98 = arith.negf %97 : vector<8x384xf32>
      %99 = math.exp %98 : vector<8x384xf32>
      %cst_82 = arith.constant 1.000000e+00 : f32
      %100 = vector.broadcast %cst_82 : f32 to vector<8x384xf32>
      %101 = arith.addf %100, %99 : vector<8x384xf32>
      %102 = arith.divf %100, %101 : vector<8x384xf32>
      %103 = vector.extract_strided_slice %96 {offsets = [0, 384], sizes = [8, 128], strides = [1, 1]} : vector<8x512xf32> to vector<8x128xf32>
      %104 = math.tanh %103 : vector<8x128xf32>
      %105 = vector.extract_strided_slice %102 {offsets = [0, 0], sizes = [8, 128], strides = [1, 1]} : vector<8x384xf32> to vector<8x128xf32>
      %106 = vector.extract_strided_slice %102 {offsets = [0, 128], sizes = [8, 128], strides = [1, 1]} : vector<8x384xf32> to vector<8x128xf32>
      %107 = vector.extract_strided_slice %102 {offsets = [0, 256], sizes = [8, 128], strides = [1, 1]} : vector<8x384xf32> to vector<8x128xf32>
      %108 = arith.mulf %106, %87 : vector<8x128xf32>
      %109 = arith.mulf %105, %104 : vector<8x128xf32>
      %110 = arith.addf %108, %109 : vector<8x128xf32>
      %111 = math.tanh %110 : vector<8x128xf32>
      %112 = arith.mulf %107, %111 : vector<8x128xf32>
      %c0_83 = arith.constant 0 : index
      %c0_84 = arith.constant 0 : index
      %c0_85 = arith.constant 0 : index
      %113 = vector.load %arg14[%c0_83, %c0_84, %c0_85] : memref<2x8x128xf32, #tpu.memory_space<vmem>>, vector<1x8x128xf32>
      %114 = vector.shape_cast %113 : vector<1x8x128xf32> to vector<8x128xf32>
      %115 = vector.shape_cast %112 : vector<8x128xf32> to vector<1x8x128xf32>
      tpu.vector_store %arg14[%c0_83, %c0_84, %c0_85], %115 {strides = array<i32>} : memref<2x8x128xf32, #tpu.memory_space<vmem>>, vector<1x8x128xf32>,
      %c0_86 = arith.constant 0 : index
      %c0_87 = arith.constant 0 : index
      %c0_88 = arith.constant 0 : index
      %116 = vector.load %arg15[%c0_86, %c0_87, %c0_88] : memref<2x8x128xf32, #tpu.memory_space<vmem>>, vector<1x8x128xf32>
      %117 = vector.shape_cast %116 : vector<1x8x128xf32> to vector<8x128xf32>
      %118 = vector.shape_cast %110 : vector<8x128xf32> to vector<1x8x128xf32>
      tpu.vector_store %arg15[%c0_86, %c0_87, %c0_88], %118 {strides = array<i32>} : memref<2x8x128xf32, #tpu.memory_space<vmem>>, vector<1x8x128xf32>,
      %119 = arith.truncf %112 : vector<8x128xf32> to vector<8x128xbf16>
      %c1_89 = arith.constant 1 : index
      %c0_90 = arith.constant 0 : index
      %c0_91 = arith.constant 0 : index
      %120 = vector.load %arg3[%c1_89, %c0_90, %c0_91] : memref<2x8x128xf32, #tpu.memory_space<vmem>>, vector<1x8x128xf32>
      %121 = vector.shape_cast %120 : vector<1x8x128xf32> to vector<8x128xf32>
      %c1_92 = arith.constant 1 : index
      %c0_93 = arith.constant 0 : index
      %c0_94 = arith.constant 0 : index
      %122 = vector.load %arg4[%c1_92, %c0_93, %c0_94] : memref<2x8x128xf32, #tpu.memory_space<vmem>>, vector<1x8x128xf32>
      %123 = vector.shape_cast %122 : vector<1x8x128xf32> to vector<8x128xf32>
      %c0_95 = arith.constant 0 : index
      %c0_96 = arith.constant 0 : index
      %124 = vector.load %arg8[%c0_95, %c0_96] : memref<128x512xbf16, #tpu.memory_space<vmem>>, vector<128x512xbf16>
      %cst_97 = arith.constant dense<0.000000e+00> : vector<8x512xf32>
      %125 = tpu.matmul %119, %124, %cst_97 {dimension_numbers = #tpu.dot_dimension_numbers<[1], [0], [0], [1], [0, 0, 1, 1], [], []>} : vector<8x128xbf16>, vector<128x512xbf16>, vector<8x512xf32> -> vector<8x512xf32>
      %126 = arith.truncf %121 : vector<8x128xf32> to vector<8x128xbf16>
      %c0_98 = arith.constant 0 : index
      %c0_99 = arith.constant 0 : index
      %127 = vector.load %arg9[%c0_98, %c0_99] : memref<128x512xbf16, #tpu.memory_space<vmem>>, vector<128x512xbf16>
      %cst_100 = arith.constant dense<0.000000e+00> : vector<8x512xf32>
      %128 = tpu.matmul %126, %127, %cst_100 {dimension_numbers = #tpu.dot_dimension_numbers<[1], [0], [0], [1], [0, 0, 1, 1], [], []>} : vector<8x128xbf16>, vector<128x512xbf16>, vector<8x512xf32> -> vector<8x512xf32>
      %129 = arith.addf %125, %128 : vector<8x512xf32>
      %c0_101 = arith.constant 0 : index
      %c0_102 = arith.constant 0 : index
      %130 = vector.load %arg10[%c0_101, %c0_102] : memref<1x512xf32, #tpu.memory_space<vmem>>, vector<1x512xf32>
      %131 = vector.broadcast %130 : vector<1x512xf32> to vector<8x512xf32>
      %132 = arith.addf %129, %131 : vector<8x512xf32>
      %133 = vector.extract_strided_slice %132 {offsets = [0, 0], sizes = [8, 384], strides = [1, 1]} : vector<8x512xf32> to vector<8x384xf32>
      %134 = arith.negf %133 : vector<8x384xf32>
      %135 = math.exp %134 : vector<8x384xf32>
      %cst_103 = arith.constant 1.000000e+00 : f32
      %136 = vector.broadcast %cst_103 : f32 to vector<8x384xf32>
      %137 = arith.addf %136, %135 : vector<8x384xf32>
      %138 = arith.divf %136, %137 : vector<8x384xf32>
      %139 = vector.extract_strided_slice %132 {offsets = [0, 384], sizes = [8, 128], strides = [1, 1]} : vector<8x512xf32> to vector<8x128xf32>
      %140 = math.tanh %139 : vector<8x128xf32>
      %141 = vector.extract_strided_slice %138 {offsets = [0, 0], sizes = [8, 128], strides = [1, 1]} : vector<8x384xf32> to vector<8x128xf32>
      %142 = vector.extract_strided_slice %138 {offsets = [0, 128], sizes = [8, 128], strides = [1, 1]} : vector<8x384xf32> to vector<8x128xf32>
      %143 = vector.extract_strided_slice %138 {offsets = [0, 256], sizes = [8, 128], strides = [1, 1]} : vector<8x384xf32> to vector<8x128xf32>
      %144 = arith.mulf %142, %123 : vector<8x128xf32>
      %145 = arith.mulf %141, %140 : vector<8x128xf32>
      %146 = arith.addf %144, %145 : vector<8x128xf32>
      %147 = math.tanh %146 : vector<8x128xf32>
      %148 = arith.mulf %143, %147 : vector<8x128xf32>
      %c1_104 = arith.constant 1 : index
      %c0_105 = arith.constant 0 : index
      %c0_106 = arith.constant 0 : index
      %149 = vector.load %arg14[%c1_104, %c0_105, %c0_106] : memref<2x8x128xf32, #tpu.memory_space<vmem>>, vector<1x8x128xf32>
      %150 = vector.shape_cast %149 : vector<1x8x128xf32> to vector<8x128xf32>
      %151 = vector.shape_cast %148 : vector<8x128xf32> to vector<1x8x128xf32>
      tpu.vector_store %arg14[%c1_104, %c0_105, %c0_106], %151 {strides = array<i32>} : memref<2x8x128xf32, #tpu.memory_space<vmem>>, vector<1x8x128xf32>,
      %c1_107 = arith.constant 1 : index
      %c0_108 = arith.constant 0 : index
      %c0_109 = arith.constant 0 : index
      %152 = vector.load %arg15[%c1_107, %c0_108, %c0_109] : memref<2x8x128xf32, #tpu.memory_space<vmem>>, vector<1x8x128xf32>
      %153 = vector.shape_cast %152 : vector<1x8x128xf32> to vector<8x128xf32>
      %154 = vector.shape_cast %146 : vector<8x128xf32> to vector<1x8x128xf32>
      tpu.vector_store %arg15[%c1_107, %c0_108, %c0_109], %154 {strides = array<i32>} : memref<2x8x128xf32, #tpu.memory_space<vmem>>, vector<1x8x128xf32>,
      %155 = arith.truncf %148 : vector<8x128xf32> to vector<8x128xbf16>
      %c0_110 = arith.constant 0 : index
      %c0_111 = arith.constant 0 : index
      %156 = vector.load %arg17[%c0_110, %c0_111] : memref<8x128xbf16, #tpu.memory_space<vmem>>, vector<8x128xbf16>
      tpu.vector_store %arg17[%c0_110, %c0_111], %155 {strides = array<i32>} : memref<8x128xbf16, #tpu.memory_space<vmem>>, vector<8x128xbf16>,
    } else {
    }
    %c0 = arith.constant 0 : index
    %c0_1 = arith.constant 0 : index
    %3 = vector.load %arg17[%c0, %c0_1] : memref<8x128xbf16, #tpu.memory_space<vmem>>, vector<8x128xbf16>
    %c0_2 = arith.constant 0 : index
    %c0_3 = arith.constant 0 : index
    %4 = vector.load %arg11[%c0_2, %c0_3] : memref<128x256xbf16, #tpu.memory_space<vmem>>, vector<128x256xbf16>
    %cst = arith.constant dense<0.000000e+00> : vector<8x256xf32>
    %5 = tpu.matmul %3, %4, %cst {dimension_numbers = #tpu.dot_dimension_numbers<[1], [0], [0], [1], [0, 0, 1, 1], [], []>} : vector<8x128xbf16>, vector<128x256xbf16>, vector<8x256xf32> -> vector<8x256xf32>
    %c0_4 = arith.constant 0 : index
    %c0_5 = arith.constant 0 : index
    %6 = vector.load %arg12[%c0_4, %c0_5] : memref<1x256xf32, #tpu.memory_space<vmem>>, vector<1x256xf32>
    %7 = vector.broadcast %6 : vector<1x256xf32> to vector<8x256xf32>
    %8 = arith.addf %5, %7 : vector<8x256xf32>
    %c0_6 = arith.constant 0 : index
    %c0_7 = arith.constant 0 : index
    %9 = vector.load %arg13[%c0_6, %c0_7] : memref<8x256xf32, #tpu.memory_space<vmem>>, vector<8x256xf32>
    tpu.vector_store %arg13[%c0_6, %c0_7], %8 {strides = array<i32>} : memref<8x256xf32, #tpu.memory_space<vmem>>, vector<8x256xf32>,
    return
  }
  func.func @transform_1(%arg0: i32, %arg1: memref<8xi32, #tpu.memory_space<smem>>) -> (i32, i32, i32) {
    %c0_i32 = arith.constant 0 : i32
    %c0_i32_0 = arith.constant 0 : i32
    %c0_i32_1 = arith.constant 0 : i32
    %c0_i32_2 = arith.constant 0 : i32
    return %c0_i32, %c0_i32_0, %c0_i32_1 : i32, i32, i32
  }
  func.func @transform_2(%arg0: i32, %arg1: memref<8xi32, #tpu.memory_space<smem>>) -> (i32, i32, i32) {
    %c0_i32 = arith.constant 0 : i32
    %c0_i32_0 = arith.constant 0 : i32
    %c0_i32_1 = arith.constant 0 : i32
    %c0_i32_2 = arith.constant 0 : i32
    return %c0_i32, %c0_i32_0, %c0_i32_1 : i32, i32, i32
  }
  func.func @transform_3(%arg0: i32, %arg1: memref<8xi32, #tpu.memory_space<smem>>) -> (i32, i32) {
    %c0_i32 = arith.constant 0 : i32
    %c0_i32_0 = arith.constant 0 : i32
    %c0_i32_1 = arith.constant 0 : i32
    return %c0_i32, %c0_i32_0 : i32, i32
  }
  func.func @transform_4(%arg0: i32, %arg1: memref<8xi32, #tpu.memory_space<smem>>) -> (i32, i32) {
    %c0_i32 = arith.constant 0 : i32
    %c0_i32_0 = arith.constant 0 : i32
    %c0_i32_1 = arith.constant 0 : i32
    return %c0_i32, %c0_i32_0 : i32, i32
  }
  func.func @transform_5(%arg0: i32, %arg1: memref<8xi32, #tpu.memory_space<smem>>) -> (i32, i32) {
    %c0_i32 = arith.constant 0 : i32
    %c0_i32_0 = arith.constant 0 : i32
    %c0_i32_1 = arith.constant 0 : i32
    return %c0_i32, %c0_i32_0 : i32, i32
  }
  func.func @transform_6(%arg0: i32, %arg1: memref<8xi32, #tpu.memory_space<smem>>) -> (i32, i32) {
    %c0_i32 = arith.constant 0 : i32
    %c0_i32_0 = arith.constant 0 : i32
    %c0_i32_1 = arith.constant 0 : i32
    return %c0_i32, %c0_i32_0 : i32, i32
  }
  func.func @transform_7(%arg0: i32, %arg1: memref<8xi32, #tpu.memory_space<smem>>) -> (i32, i32) {
    %c0_i32 = arith.constant 0 : i32
    %c0_i32_0 = arith.constant 0 : i32
    %c0_i32_1 = arith.constant 0 : i32
    return %c0_i32, %c0_i32_0 : i32, i32
  }
  func.func @transform_8(%arg0: i32, %arg1: memref<8xi32, #tpu.memory_space<smem>>) -> (i32, i32) {
    %c0_i32 = arith.constant 0 : i32
    %c0_i32_0 = arith.constant 0 : i32
    %c0_i32_1 = arith.constant 0 : i32
    return %c0_i32, %c0_i32_0 : i32, i32
  }
  func.func @transform_9(%arg0: i32, %arg1: memref<8xi32, #tpu.memory_space<smem>>) -> (i32, i32) {
    %c0_i32 = arith.constant 0 : i32
    %c0_i32_0 = arith.constant 0 : i32
    return %c0_i32, %arg0 : i32, i32
  }
  func.func @transform_10(%arg0: i32, %arg1: memref<8xi32, #tpu.memory_space<smem>>) -> (i32, i32) {
    %c0_i32 = arith.constant 0 : i32
    %c0_i32_0 = arith.constant 0 : i32
    return %c0_i32, %arg0 : i32, i32
  }
  func.func @transform_11(%arg0: i32, %arg1: memref<8xi32, #tpu.memory_space<smem>>) -> (i32, i32) {
    %c0_i32 = arith.constant 0 : i32
    %c0_i32_0 = arith.constant 0 : i32
    return %c0_i32, %arg0 : i32, i32
  }
  func.func @transform_12(%arg0: i32, %arg1: memref<8xi32, #tpu.memory_space<smem>>) -> (i32, i32, i32) {
    %c0_i32 = arith.constant 0 : i32
    %c0_i32_0 = arith.constant 0 : i32
    %c0_i32_1 = arith.constant 0 : i32
    %c0_i32_2 = arith.constant 0 : i32
    return %c0_i32, %c0_i32_0, %c0_i32_1 : i32, i32, i32
  }
  func.func @transform_13(%arg0: i32, %arg1: memref<8xi32, #tpu.memory_space<smem>>) -> (i32, i32, i32) {
    %c0_i32 = arith.constant 0 : i32
    %c0_i32_0 = arith.constant 0 : i32
    %c0_i32_1 = arith.constant 0 : i32
    %c0_i32_2 = arith.constant 0 : i32
    return %c0_i32, %c0_i32_0, %c0_i32_1 : i32, i32, i32
  }
}

</mosaic_0001>

<bundles_post_ra>
// kernel: decoder_forward.1
= control target key start
LH: loop header
LB: loop body
LE: loop exit
PB: predicated region body
PF: predicated region fallthrough
CT: control target
= control target key end

     0   :  { %s4180_s0 = inlined_call_operand.vmem [shape: s32[8], index: 0, kind: input, shape index: {}]   ;;  %s4181_s1 = inlined_call_operand.hbm [shape: f32[512,128], index: 1, kind: input, shape index: {}]   ;;  %s4182_s2 = inlined_call_operand.vmem [shape: f32[2,8,128], index: 2, kind: input, shape index: {}]   ;;  %s4183_s3 = inlined_call_operand.hbm [shape: f32[2,8,128], index: 3, kind: input, shape index: {}]   ;;  %s4184_s4 = inlined_call_operand.hbm [shape: bf16[128,512], index: 4, kind: input, shape index: {}]   ;;  %s4185_s5 = inlined_call_operand.hbm [shape: bf16[128,512], index: 5, kind: input, shape index: {}]   ;;  %s4186_s6 = inlined_call_operand.hbm [shape: f32[1,512], index: 6, kind: input, shape index: {}]   ;;  %s4187_s7 = inlined_call_operand.hbm [shape: bf16[128,512], index: 7, kind: input, shape index: {}]   ;;  %s4188_s8 = inlined_call_operand.hbm [shape: bf16[128,512], index: 8, kind: input, shape index: {}]   ;;  %s4189_s9 = inlined_call_operand.hbm [shape: f32[1,512], index: 9, kind: input, shape index: {}]   ;;  %s4190_s10 = inlined_call_operand.hbm [shape: bf16[128,512], index: 10, kind: input, shape index: {}]   ;;  %s4191_s11 = inlined_call_operand.hbm [shape: f32[1,512], index: 11, kind: input, shape index: {}]   ;;  %s4192_s12 = inlined_call_operand.hbm [shape: f32[8,512], index: 12, kind: output, shape index: {0}]   ;;  %s4193_s13 = inlined_call_operand.hbm [shape: f32[2,8,128], index: 13, kind: output, shape index: {1}]   ;;  %s4194_s14 = inlined_call_operand.hbm [shape: f32[2,8,128], index: 14, kind: output, shape index: {2}]  }
   0x1   :  { %4217 = sst [smem:[#allocation65_spill]] %s4183_s3  ;;  %s20_s15 = sshll.u32 %s4180_s0, 4  ;;  %s21_s15 = int_to_ptr.vmem [resolvable:$true] %s20_s15 }
   0x2   :  { %4218 = sst [smem:[#allocation66_spill]] %s4184_s4  ;;  %s2994_s16 = scalar_lea.vmem %s21_s15, 16 }
   0x3   :  { %4219 = sst [smem:[#allocation67_spill]] %s4185_s5  ;;  %p2995_p0 = scmp.ne.s32.totalorder %s21_s15, %s2994_s16 }
   0x4   :  { %4220 = sst [smem:[#allocation68_spill]] %s4186_s6  ;;  %p2999_p1 = scmp.lt.s32.totalorder %s21_s15, %s21_s15 }
   0x5   :  { %4221 = sst [smem:[#allocation69_spill]] %s4187_s7  ;;  %p3000_p2 = scmp.lt.s32.totalorder %s2994_s16, %s2994_s16 }
   0x6   :  { %4222 = sst [smem:[#allocation70_spill]] %s4188_s8 }
   0x7   :  { %4223 = sst [smem:[#allocation71_spill]] %s4189_s9  ;;  %p3001_p3 = por %p3000_p2, %p2999_p1 }
   0x8   :  { %4224 = sst [smem:[#allocation72_spill]] %s4190_s10 }
   0x9   :  { %4225 = sst [smem:[#allocation73_spill]] %s4191_s11  ;;  %p3002_p4 = pnand %p3001_p3, %p2995_p0 }
   0xa   :  { %4226 = sst [smem:[#allocation74_spill]] %s4192_s12 }
   0xb   :  { %3005 = shalt.err (!%p3002_p4)  }
   0xc   :  { %s3572_s17 = smov [#allocation6]  }
   0xd   :  { %23 = dma.vmem_to_smem %s21_s15, 16, %s3572_s17, [#allocation5] }
   0xe   :  { %3510 = dma.done.wait [#allocation5], 16 }
   0xf   :  { %3511 = vsyncadd [#allocation5], 4294967280 }
  0x10   :  { %25 = sfence }
  0x11   :  { %26 = vsyncpa [#allocation8], 0 }
  0x12   :  { %27 = vsyncpa [#allocation11], 0 }
  0x13   :  { %28 = vsyncpa [#allocation14], 0 }
  0x14   :  { %29 = vsyncpa [#allocation17], 0 }
  0x15   :  { %30 = vsyncpa [#allocation20], 0 }
  0x16   :  { %32 = vsyncpa [#allocation20 + $0x1], 0 }
  0x17   :  { %33 = vsyncpa [#allocation9], 0 }
  0x18   :  { %35 = vsyncpa [#allocation9 + $0x1], 0 }
  0x19   :  { %36 = vsyncpa [#allocation24], 0  ;;  %s3679_s0 = smov 0   ;;  %s3681_s18 = smov 0  }
  0x1a   :  { %s3683_s19 = smov 0   ;;  %s3685_s20 = smov 0  }
  0x1b LB: > { %4227 = sst [smem:[#allocation60_spill]] %s3558_s0  ;;  %s3573_s21 = smov [#allocation10]   ;;  %s3570_s20 = sphi %s3685_s20, %s4281_s20   ;;  %s3566_s19 = sphi %s3683_s19, %s4285_s19   ;;  %s3562_s18 = sphi %s3681_s18, %s4284_s18   ;;  %s3558_s0 = sphi %s3679_s0, %s4283_s0  }
  0x1c   : > { %s363_s22 = sshll.u32 %s3573_s21, 4  ;;  %s3700_s23 = sadd.s32 4294967295, %s3570_s20   ;;  %s364_s22 = int_to_ptr.vmem [resolvable:$true] %s363_s22 }
  0x1d   : > { %p2380_p5 = scmp.ge.s32.totalorder %s3570_s20, 1  ;;  %p4208_p6 = scmp.eq.s32.totalorder %s3700_s23, 0 }
  0x1e   : > { %p335_p7 = scmp.lt.s32.totalorder %s3570_s20, 3  ;;  %s3574_s25 = smov [#allocation13]  }
  0x1f   : > { %s390_s26 = sshll.u32 %s3574_s25, 4  ;;  %s3575_s28 = smov [#allocation16]   ;;  %s391_s26 = int_to_ptr.vmem [resolvable:$true] %s390_s26 }
  0x20   : > { %p3706_p9 = pnand %p2380_p5, %p335_p7  ;;  %s413_s29 = sshll.u32 %s3575_s28, 4  ;;  %s3719_s29 = int_to_ptr.vmem [resolvable:$true] %s413_s29 }
  0x21   : > { %s3017_s15 = scalar_lea.vmem %s364_s22, 4096  ;;  %p3025_p3 = scmp.lt.s32.totalorder %s364_s22, %s364_s22 }
  0x22   : > { %s4228_s24 = scalar_select %p3706_p9, 1, 0 }
  0x23   : > { %p2635_p11 = pneg %p3706_p9  ;;  %p3018_p0 = scmp.ne.s32.totalorder %s364_s22, %s3017_s15 }
  0x24   : > { %p3026_p4 = scmp.lt.s32.totalorder %s3017_s15, %s3017_s15 }
  0x25   : > { %p3715_p12 = pnand %p2635_p11, %p4208_p6 }
  0x26   : > { %p3027_p5 = por %p3026_p4, %p3025_p3 }
  0x27   : > { %s4229_s27 = scalar_select %p3715_p12, 1, 0 }
  0x28   : > { %p3723_p13 = pneg %p3715_p12 }
  0x2a   : > { %p3020_p1 = pnand %p3018_p0, %p3723_p13 }
  0x2c   : > { %p3021_p2 = pneg %p3020_p1 }
  0x2e   : > { %p3028_p7 = pnand %p3027_p5, %p3021_p2 }
  0x30   : > { %3031 = shalt.err (!%p3028_p7)
}
  0x31   : > { %s4198_s16 = smov 256   ;;  %s4196_s17 = smov 16  }
  0x32   : > { %s4231_s4 = sld [smem:[#allocation66_spill]]  ;;  %s3043_s28 = scalar_lea.vmem %s391_s26, 64 }
  0x33   : > { %p3044_p11 = scmp.ne.s32.totalorder %s391_s26, %s3043_s28  ;;  %p3051_p3 = scmp.lt.s32.totalorder %s391_s26, %s391_s26 }
  0x34   : > { %p3052_p2 = scmp.lt.s32.totalorder %s3043_s28, %s3043_s28 }
  0x35   : > { %p3046_p0 = pnand %p3044_p11, %p3723_p13 }
  0x36   : > { %p3053_p4 = por %p3052_p2, %p3051_p3 }
  0x37   : > { %p3047_p1 = pneg %p3046_p0 }
  0x38   : > { %2641 = dma.hbm_to_vmem [thread:$0]  (!%p3715_p12), %s4231_s4, 4096, %s364_s22, [#allocation11], %s4198_s16, %s4198_s16, %s4196_s17  }
  0x39   : > { %p3054_p5 = pnand %p3053_p4, %p3047_p1 }
  0x3b   : > { %3057 = shalt.err (!%p3054_p5)
}
  0x3c   : > { %s4232_s6 = sld [smem:[#allocation68_spill]]  ;;  %s3069_s22 = scalar_lea.vmem %s3719_s29, 4096 }
  0x3d   : > { %p3070_p7 = scmp.ne.s32.totalorder %s3719_s29, %s3069_s22  ;;  %p3077_p10 = scmp.lt.s32.totalorder %s3719_s29, %s3719_s29 }
  0x3e   : > { %p3078_p3 = scmp.lt.s32.totalorder %s3069_s22, %s3069_s22 }
  0x3f   : > { %p3072_p11 = pnand %p3070_p7, %p3723_p13 }
  0x40   : > { %p3079_p1 = por %p3078_p3, %p3077_p10 }
  0x41   : > { %p3073_p0 = pneg %p3072_p11 }
  0x42   : > { %2647 = dma.hbm_to_vmem [thread:$0]  (!%p3715_p12), %s4232_s6, 64, %s391_s26, [#allocation14]  }
  0x43   : > { %p3080_p2 = pnand %p3079_p1, %p3073_p0 }
  0x45   : > { %3083 = shalt.err (!%p3080_p2)
}
  0x46   : > { %s4233_s8 = sld [smem:[#allocation70_spill]]  ;;  %s2379_s26 = sadd.s32 4294967294, %s3570_s20  }
  0x47   : > { %s3761_s25 = sadd.s32 1, %s3570_s20   ;;  %s217_s28 = sadd.s32 1, %s3566_s19 }
  0x48   : > { %4234 = sst [smem:[#allocation61_spill]] %s3761_s25  ;;  %s214_s15 = ssub.s32 %s3570_s20, %s3761_s25 }
  0x49   : > { %p224_p10 = scmp.ne.s32.totalorder %s3566_s19, %s3562_s18  ;;  %p215_p4 = scmp.eq.s32.totalorder %s214_s15, 0 }
  0x4a   : > { %p225_p5 = scmp.eq.s32.totalorder %s3570_s20, 0  ;;  %p230_p7 = scmp.ne.s32.totalorder %s3562_s18, %s3558_s0 }
  0x4b   : > { %p4205_p11 = scmp.eq.s32.totalorder %s3700_s23, 1  ;;  %p286_p2 = scmp.eq.s32.totalorder %s2379_s26, 1 }
  0x4c   : > { %2653 = dma.hbm_to_vmem [thread:$0]  (!%p3715_p12), %s4233_s8, 4096, %s3719_s29, [#allocation17], %s4198_s16, %s4198_s16, %s4196_s17  }
  0x4d   : > { %s3773_s22 = scalar_select %p215_p4, %s3566_s19, %s217_s28  }
  0x4e   : > { %p3775_p0 = por %p225_p5, %p224_p10  ;;  %p3781_p3 = por %p4208_p6, %p230_p7 }
  0x4f   : > { %4235 = sst [smem:[#allocation62_spill]] %s3773_s22  ;;  %p3787_p1 = por %p4205_p11, %p224_p10 }
  0x50   : > { %s4237_s12 = scalar_select %p3781_p3, 1, 0 }
  0x51   : > { %s4238_s21 = scalar_select %p3787_p1, 1, 0 }
  0x52   : > { %p3791_p8 = por %p286_p2, %p230_p7  ;;  %p2675_p4 = scmp.lt.s32.totalorder %s3570_s20, 2 }
  0x53   : > { %4239 = sst [smem:[#allocation63_spill]] %s4238_s21  ;;  %s438_s28 = sand.u32 1, %s3570_s20  }
  0x54   : > { %s4240_s15 = scalar_select %p3791_p8, 1, 0 }
  0x55   : > { %s4203_s17 = sand.u32 1, %s3566_s19   ;;  %s2590_s4 = sshll.u32 %s3570_s20, 7 }
  0x56   : > { %4241 = sst [smem:[#allocation64_spill]] %s4240_s15  ;;  %s2389_s16 = sshll.u32 %s4203_s17, 7 }
  0x57   : > { %s4242_s10 = sld [smem:[#allocation72_spill]]  ;;  %s442_s25 = scalar_lea.vmem [#allocation19], %s2389_s16 }
  0x58   : > { %s449_s26 = sshll.u32 %s442_s25, 4  ;;  %p3810_p10 = pnand %p2675_p4, %p3775_p0  ;;  %s3806_s26 = int_to_ptr.vmem [resolvable:$true] %s449_s26 }
  0x59   : > { %s3578_s17 = smov [#allocation7]   ;;  %s3816_s6 = scalar_lea.sflag [#allocation20], %s438_s28 }
  0x5a   : > { %s4243_s15 = scalar_select %p3810_p10, 1, 0 }
  0x5b   : > { %s3814_s0 = sshll.u32 %s3578_s17, 4  ;;  %p4214_p7 = pneg %p3810_p10  ;;  %s351_s0 = int_to_ptr.vmem [resolvable:$true] %s3814_s0 }
  0x5d   : > { %s3804_s22 = scalar_lea.hbm %s4242_s10, %s2590_s4  ;;  %s3089_s25 = scalar_lea.hbm %s4242_s10, 4096 }
  0x5e   : > { %s3084_s4 = scalar_lea.hbm %s3804_s22, 2048  ;;  %p3090_p0 = scmp.lt.s32.totalorder %s3804_s22, %s4242_s10 }
  0x5f   : > { %p3085_p5 = scmp.ne.s32.totalorder %s3804_s22, %s3084_s4  ;;  %p3091_p4 = scmp.lt.s32.totalorder %s3089_s25, %s3084_s4 }
  0x61   : > { %p3087_p2 = pnand %p4214_p7, %p3085_p5  ;;  %p3092_p6 = por %p3091_p4, %p3090_p0 }
  0x63   : > { %p3088_p11 = pneg %p3087_p2 }
  0x65   : > { %p3093_p8 = pnand %p3092_p6, %p3088_p11 }
  0x67   : > { %3096 = shalt.err (!%p3093_p8)
}
  0x68   : > { %s3097_s17 = scalar_lea.vmem %s3806_s26, 2048  ;;  %s3579_s28 = smov [#allocation19]  }
  0x69   : > { %p3098_p1 = scmp.ne.s32.totalorder %s3806_s26, %s3097_s17  ;;  %s3102_s8 = sshll.u32 %s3579_s28, 4  ;;  %s3103_s8 = int_to_ptr.vmem [resolvable:$false] %s3102_s8 }
  0x6a   : > { %s3104_s16 = scalar_lea.vmem %s3103_s8, 4096  ;;  %p3105_p3 = scmp.lt.s32.totalorder %s3806_s26, %s3103_s8 }
  0x6b   : > { %p3100_p5 = pnand %p3098_p1, %p4214_p7  ;;  %p3106_p9 = scmp.lt.s32.totalorder %s3104_s16, %s3097_s17 }
  0x6d   : > { %p3101_p2 = pneg %p3100_p5  ;;  %p3107_p12 = por %p3106_p9, %p3105_p3 }
  0x6f   : > { %p3108_p0 = pnand %p3107_p12, %p3101_p2 }
  0x71   : > { %3111 = shalt.err (!%p3108_p0)
}
  0x72   : > { %s3580_s21 = smov 128   ;;  %s3581_s4 = smov 8  }
  0x73   : > { %s4244_s25 = smov 256   ;;  %s3582_s29 = smov [#allocation12]  }
  0x74   : > { %2660 = dma.hbm_to_vmem [thread:$0]  (!%p3810_p10), %s3804_s22, 2048, %s3806_s26, %s3816_s6, %s4244_s25, %s3580_s21, %s3581_s4  }
  0x75   : > { %s376_s28 = sshll.u32 %s3582_s29, 4  ;;  %s3123_s10 = scalar_lea.vmem %s351_s0, 256  ;;  %s377_s28 = int_to_ptr.vmem [resolvable:$true] %s376_s28 }
  0x76   : > { %p3124_p6 = scmp.ne.s32.totalorder %s351_s0, %s3123_s10  ;;  %p3131_p12 = scmp.lt.s32.totalorder %s351_s0, %s351_s0 }
  0x77   : > { %p3132_p11 = scmp.lt.s32.totalorder %s3123_s10, %s3123_s10 }
  0x78   : > { %p3126_p8 = pnand %p3124_p6, %p3723_p13 }
  0x79   : > { %p3133_p3 = por %p3132_p11, %p3131_p12 }
  0x7a   : > { %p3127_p9 = pneg %p3126_p8 }
  0x7c   : > { %p3134_p1 = pnand %p3133_p3, %p3127_p9 }
  0x7e   : > { %3137 = shalt.err (!%p3134_p1)
}
  0x7f   : > { %p4245_p4 = scmp.ne.s32.totalorder %s4229_s27, 0  ;;  %s4246_s3 = sld [smem:[#allocation65_spill]] }
  0x80   : > { %s3149_s22 = scalar_lea.vmem %s377_s28, 4096  ;;  %p3157_p6 = scmp.lt.s32.totalorder %s377_s28, %s377_s28 }
  0x81   : > { %p3150_p5 = scmp.ne.s32.totalorder %s377_s28, %s3149_s22  ;;  %p3158_p8 = scmp.lt.s32.totalorder %s3149_s22, %s3149_s22 }
  0x83   : > { %p3152_p2 = pnand %p3150_p5, %p3723_p13  ;;  %p3159_p7 = por %p3158_p8, %p3157_p6 }
  0x85   : > { %2638 = dma.hbm_to_vmem [thread:$0]  (!%p4245_p4), %s4246_s3, 256, %s351_s0, [#allocation8], %s3580_s21, %s3580_s21, %s3581_s4  }
  0x86   : > { %p3153_p0 = pneg %p3152_p2 }
  0x88   : > { %p3160_p10 = pnand %p3159_p7, %p3153_p0 }
  0x8a   : > { %3163 = shalt.err (!%p3160_p10)
}
  0x8b   : > { %s4247_s10 = smov 16   ;;  %s4248_s5 = sld [smem:[#allocation67_spill]] }
  0x8c   : > { %s3583_s0 = smov [#allocation15]   ;;  %s3584_s4 = smov [#allocation18]  }
  0x8d   : > { %s400_s21 = sshll.u32 %s3583_s0, 4  ;;  %s427_s29 = sshll.u32 %s3584_s4, 4  ;;  %s401_s21 = int_to_ptr.vmem [resolvable:$true] %s400_s21  ;;  %s428_s29 = int_to_ptr.vmem [resolvable:$true] %s427_s29 }
  0x8e   : > { %s3175_s17 = scalar_lea.vmem %s401_s21, 4096  ;;  %p3183_p12 = scmp.lt.s32.totalorder %s401_s21, %s401_s21 }
  0x8f   : > { %p3176_p9 = scmp.ne.s32.totalorder %s401_s21, %s3175_s17  ;;  %p3184_p11 = scmp.lt.s32.totalorder %s3175_s17, %s3175_s17 }
  0x91   : > { %2644 = dma.hbm_to_vmem [thread:$0]  (!%p4245_p4), %s4248_s5, 4096, %s377_s28, [#allocation11], %s4244_s25, %s4244_s25, %s4247_s10  }
  0x92   : > { %p3178_p7 = pnand %p3176_p9, %p3723_p13  ;;  %p3185_p3 = por %p3184_p11, %p3183_p12 }
  0x94   : > { %p3179_p10 = pneg %p3178_p7 }
  0x96   : > { %p3186_p1 = pnand %p3185_p3, %p3179_p10 }
  0x98   : > { %3189 = shalt.err (!%p3186_p1)
}
  0x99   : > { %s4249_s7 = sld [smem:[#allocation69_spill]]  ;;  %s4250_s22 = sand.u32 1, %s3566_s19  }
  0x9a   : > { %s2392_s26 = sshll.u32 %s4250_s22, 1  ;;  %s3201_s16 = scalar_lea.vmem %s428_s29, 64 }
  0x9b   : > { %p3202_p5 = scmp.ne.s32.totalorder %s428_s29, %s3201_s16  ;;  %p3209_p6 = scmp.lt.s32.totalorder %s428_s29, %s428_s29 }
  0x9c   : > { %p3210_p8 = scmp.lt.s32.totalorder %s3201_s16, %s3201_s16 }
  0x9d   : > { %p3204_p2 = pnand %p3202_p5, %p3723_p13 }
  0x9e   : > { %p3211_p9 = por %p3210_p8, %p3209_p6 }
  0x9f   : > { %2650 = dma.hbm_to_vmem [thread:$0]  (!%p4245_p4), %s4249_s7, 4096, %s401_s21, [#allocation14], %s4244_s25, %s4244_s25, %s4247_s10  }
  0xa0   : > { %p3205_p0 = pneg %p3204_p2 }
  0xa2   : > { %p3212_p7 = pnand %p3211_p9, %p3205_p0 }
  0xa4   : > { %3215 = shalt.err (!%p3212_p7)
}
  0xa5   : > { %s4251_s9 = sld [smem:[#allocation71_spill]]  ;;  %s2591_s25 = sshll.u32 %s3570_s20, 5 }
  0xa6   : > { %s4252_s11 = sld [smem:[#allocation73_spill]]  ;;  %s463_s17 = scalar_lea.vmem [#allocation21], %s2392_s26 }
  0xa7   : > { %s471_s28 = sshll.u32 %s463_s17, 4  ;;  %p4253_p10 = scmp.ne.s32.totalorder %s4243_s15, 0  ;;  %s472_s28 = int_to_ptr.vmem [resolvable:$true] %s471_s28 }
  0xa9   : > { %p4254_p12 = pneg %p4253_p10 }
  0xab   : > { %2656 = dma.hbm_to_vmem [thread:$0]  (!%p4245_p4), %s4251_s9, 64, %s428_s29, [#allocation17]  }
  0xac   : > { %s469_s30 = scalar_lea.hbm %s4252_s11, %s2591_s25  ;;  %s3221_s16 = scalar_lea.hbm %s4252_s11, 64 }
  0xad   : > { %s3216_s8 = scalar_lea.hbm %s469_s30, 32  ;;  %p3222_p4 = scmp.lt.s32.totalorder %s469_s30, %s4252_s11 }
  0xae   : > { %p3217_p13 = scmp.ne.s32.totalorder %s469_s30, %s3216_s8  ;;  %p3223_p1 = scmp.lt.s32.totalorder %s3221_s16, %s3216_s8 }
  0xb0   : > { %p3219_p11 = pnand %p3217_p13, %p4254_p12  ;;  %p3224_p5 = por %p3223_p1, %p3222_p4 }
  0xb2   : > { %p3220_p3 = pneg %p3219_p11 }
  0xb4   : > { %p3225_p2 = pnand %p3224_p5, %p3220_p3 }
  0xb6   : > { %3228 = shalt.err (!%p3225_p2)
}
  0xb7   : > { %s3229_s26 = scalar_lea.vmem %s472_s28, 32  ;;  %p4255_p6 = pmov %p4254_p12 }
  0xb8   : > { %p3230_p0 = scmp.ne.s32.totalorder %s472_s28, %s3229_s26  ;;  %s3585_s4 = smov [#allocation21]  }
  0xb9   : > { %s3234_s25 = sshll.u32 %s3585_s4, 4  ;;  %s3235_s25 = int_to_ptr.vmem [resolvable:$false] %s3234_s25 }
  0xba   : > { %p3232_p8 = pnand %p3230_p0, %p4255_p6  ;;  %s3236_s10 = scalar_lea.vmem %s3235_s25, 64 }
  0xbb   : > { %p3237_p7 = scmp.lt.s32.totalorder %s472_s28, %s3235_s25  ;;  %p3238_p13 = scmp.lt.s32.totalorder %s3236_s10, %s3229_s26 }
  0xbc   : > { %p3233_p9 = pneg %p3232_p8 }
  0xbd   : > { %p3239_p12 = por %p3238_p13, %p3237_p7 }
  0xbf   : > { %p3240_p11 = pnand %p3239_p12, %p3233_p9 }
  0xc1   : > { %3243 = shalt.err (!%p3240_p11)
}
  0xc2   : > { %2663 = dma.hbm_to_vmem [thread:$0]  (!%p4253_p10), %s469_s30, 32, %s472_s28, %s3816_s6  }
  0xc3   : > { %p4256_p3 = scmp.ne.s32.totalorder %s4228_s24, 0 }
  0xc4   : > { %p4257_p4 = scmp.eq.s32.totalorder (!%p4256_p3), %s3700_s23, 0 }
  0xc5   : > { %480 = sbr.rel (%p4256_p3) target bundleno = 1219 (0x4c3), region = 60 }
  0xca   : > { %3513 = dma.done.wait (%p4257_p4), [#allocation8], 256   ;;  %p4258_p1 = pmov %p4257_p4 }
  0xcc   : > { %3515 = vsyncadd (%p4258_p1), [#allocation8], 4294967040  ;;  %p4259_p5 = pmov %p4258_p1 }
  0xcd   : > { %p4260_p2 = pmov %p4258_p1 }
  0xce   : > { %3517 = dma.done.wait (%p4259_p5), [#allocation11], 8192  }
  0xcf   : > { %3519 = vsyncadd (%p4260_p2), [#allocation11], 4294959104  ;;  %p4261_p0 = pmov %p4258_p1 }
  0xd1   : > { %3521 = dma.done.wait (%p4261_p0), [#allocation14], 4160   ;;  %p4262_p10 = pmov %p4261_p0 }
  0xd2   : > { %p4263_p6 = pmov %p4261_p0 }
  0xd3   : > { %3523 = vsyncadd (%p4262_p10), [#allocation14], 4294963136 }
  0xd4   : > { %3525 = dma.done.wait (%p4263_p6), [#allocation17], 4160   ;;  %p4264_p8 = pmov %p4261_p0 }
  0xd5   : > { %s510_s24 = sand.u32 1, %s3700_s23   ;;  %s3920_s15 = sand.u32 1, %s3562_s18  }
  0xd6   : > { %3527 = vsyncadd (%p4264_p8), [#allocation17], 4294963136  ;;  %s2403_s6 = sshll.u32 %s3920_s15, 7  ;;  %s511_s21 = scalar_lea.sflag [#allocation20], %s510_s24 }
  0xd7   : > { %s3923_s30 = scalar_lea.vmem [#allocation19], %s2403_s6  ;;  %p4265_p9 = scmp.ne.s32.totalorder %s4237_s12, 0 }
  0xd9   : > { %3529 = dma.done.wait (%p4265_p9), %s511_s21, 2080  }
  0xda   : > { %3531 = vsyncadd (%p4265_p9), %s511_s21, 4294965216  ;;  %s2404_s17 = sshll.u32 %s3920_s15, 1  ;;  %s2405_s28 = sshll.u32 %s3920_s15, 4 }
  0xdb   : > { %s3931_s8 = scalar_lea.vmem [#allocation21], %s2404_s17  ;;  %s3933_s27 = scalar_lea.vmem [#allocation22], %s2405_s28 }
  0xdc   : > { %p4266_p7 = scmp.ne.s32.totalorder %s3700_s23, 0 }
  0xdd   : > { %s577_s22 = sld [smem:[#allocation6]] (!%p4266_p7)  ;;  %s3586_s16 = smov (!%p4266_p7), [#allocation2]  }
  0xde   : > { %576 = sbr.rel (%p4266_p7) target bundleno = 970 (0x3ca), region = 100  ;;  %s587_s0 = sshll.u32 (!%p4266_p7), %s3586_s16, 4  ;;  %s3939_s0 = int_to_ptr.vmem [resolvable:$true] %s587_s0 }
  0xdf   : > { %s3937_s29 = sld [smem:[#allocation6 + $0x1]] (!%p4266_p7)  ;;  %s3587_s12 = smov (!%p4266_p7), [#allocation2 + $0x1]  }
  0xe0   : > { %s603_s26 = sshll.u32 (!%p4266_p7), %s3587_s12, 4  ;;  %s3941_s4 = sld [smem:[#allocation6 + $0x2]] (!%p4266_p7)  ;;  %s3943_s26 = int_to_ptr.vmem [resolvable:$true] %s603_s26 }
  0xe1   : > { %s3588_s25 = smov (!%p4266_p7), [#allocation2 + $0x2]   ;;  %s3945_s24 = sld [smem:[#allocation6 + $0x3]] (!%p4266_p7) }
  0xe2   : > { %s619_s10 = sshll.u32 (!%p4266_p7), %s3588_s25, 4  ;;  %s3956_s7 = scalar_lea.hbm (!%p4266_p7), %s4181_s1, 8192  ;;  %s3947_s10 = int_to_ptr.vmem [resolvable:$true] %s619_s10 }
  0xe3   : > { %s2407_s6 = sshll.u32 %s577_s22, 4 }
  0xe4   : > { %s579_s28 = scalar_lea.hbm %s4181_s1, %s2407_s6 }
  0xe5   : > { %s2409_s16 = sshll.u32 %s3937_s29, 4  ;;  %s3244_s3 = scalar_lea.hbm %s579_s28, 16 }
  0xe6   : > { %p3245_p13 = scmp.ne.s32.totalorder %s579_s28, %s3244_s3  ;;  %p3247_p12 = scmp.lt.s32.totalorder %s579_s28, %s4181_s1 }
  0xe7   : > { %p3248_p11 = scmp.lt.s32.totalorder %s3956_s7, %s3244_s3 }
  0xe9   : > { %p3249_p3 = por %p3248_p11, %p3247_p12 }
  0xeb   : > { %p3250_p4 = pnand %p3249_p3, %p3245_p13 }
  0xed   : > { %3253 = shalt.err (!%p3250_p4)  }
  0xee   : > { %s3254_s22 = scalar_lea.vmem %s3939_s0, 16  ;;  %s3965_s29 = scalar_lea.vmem %s3939_s0, 128 }
  0xef   : > { %p3255_p1 = scmp.ne.s32.totalorder %s3939_s0, %s3254_s22  ;;  %p3259_p5 = scmp.lt.s32.totalorder %s3939_s0, %s3939_s0 }
  0xf0   : > { %p3260_p2 = scmp.lt.s32.totalorder %s3965_s29, %s3254_s22 }
  0xf2   : > { %p3261_p0 = por %p3260_p2, %p3259_p5 }
  0xf4   : > { %p3262_p10 = pnand %p3261_p0, %p3255_p1 }
  0xf6   : > { %3265 = shalt.err (!%p3262_p10)  }
  0xf7   : > { %590 = dma.hbm_to_vmem [thread:$0]  %s579_s28, 16, %s3939_s0, [#allocation4] }
  0xf8   : > { %s593_s9 = scalar_lea.hbm %s4181_s1, %s2409_s16  ;;  %s2411_s11 = sshll.u32 %s3941_s4, 4 }
  0xf9   : > { %s3266_s25 = scalar_lea.hbm %s593_s9, 16  ;;  %p3269_p8 = scmp.lt.s32.totalorder %s593_s9, %s4181_s1 }
  0xfa   : > { %p3267_p6 = scmp.ne.s32.totalorder %s593_s9, %s3266_s25  ;;  %p3270_p9 = scmp.lt.s32.totalorder %s3956_s7, %s3266_s25 }
  0xfc   : > { %p3271_p7 = por %p3270_p9, %p3269_p8 }
  0xfe   : > { %p3272_p13 = pnand %p3271_p7, %p3267_p6 }
 0x100   : > { %3275 = shalt.err (!%p3272_p13)  }
 0x101   : > { %s3276_s17 = scalar_lea.vmem %s3943_s26, 16  ;;  %p3281_p11 = scmp.lt.s32.totalorder %s3943_s26, %s3939_s0 }
 0x102   : > { %p3277_p12 = scmp.ne.s32.totalorder %s3943_s26, %s3276_s17  ;;  %p3282_p3 = scmp.lt.s32.totalorder %s3965_s29, %s3276_s17 }
 0x104   : > { %p3283_p4 = por %p3282_p3, %p3281_p11 }
 0x106   : > { %p3284_p1 = pnand %p3283_p4, %p3277_p12 }
 0x108   : > { %3287 = shalt.err (!%p3284_p1)  }
 0x109   : > { %606 = dma.hbm_to_vmem [thread:$0]  %s593_s9, 16, %s3943_s26, [#allocation4 + $0x1] }
 0x10a   : > { %s609_s16 = scalar_lea.hbm %s4181_s1, %s2411_s11  ;;  %s2413_s12 = sshll.u32 %s3945_s24, 4 }
 0x10b   : > { %s3288_s22 = scalar_lea.hbm %s609_s16, 16  ;;  %p3291_p2 = scmp.lt.s32.totalorder %s609_s16, %s4181_s1 }
 0x10c   : > { %p3289_p5 = scmp.ne.s32.totalorder %s609_s16, %s3288_s22  ;;  %p3292_p0 = scmp.lt.s32.totalorder %s3956_s7, %s3288_s22 }
 0x10e   : > { %p3293_p10 = por %p3292_p0, %p3291_p2 }
 0x110   : > { %p3294_p6 = pnand %p3293_p10, %p3289_p5 }
 0x112   : > { %3297 = shalt.err (!%p3294_p6)  }
 0x113   : > { %s3298_s26 = scalar_lea.vmem %s3947_s10, 16  ;;  %p3303_p9 = scmp.lt.s32.totalorder %s3947_s10, %s3939_s0 }
 0x114   : > { %p3299_p8 = scmp.ne.s32.totalorder %s3947_s10, %s3298_s26  ;;  %p3304_p7 = scmp.lt.s32.totalorder %s3965_s29, %s3298_s26 }
 0x116   : > { %p3305_p13 = por %p3304_p7, %p3303_p9 }
 0x118   : > { %p3306_p12 = pnand %p3305_p13, %p3299_p8 }
 0x11a   : > { %3309 = shalt.err (!%p3306_p12)  }
 0x11b   : > { %622 = dma.hbm_to_vmem [thread:$0]  %s609_s16, 16, %s3947_s10, [#allocation4 + $0x2] }
 0x11c   : > { %s625_s11 = scalar_lea.hbm %s4181_s1, %s2413_s12  ;;  %s3589_s25 = smov [#allocation2 + $0x3]  }
 0x11d   : > { %s635_s6 = sshll.u32 %s3589_s25, 4  ;;  %s2414_s21 = sld [smem:[#allocation6 + $0x4]]  ;;  %s636_s6 = int_to_ptr.vmem [resolvable:$true] %s635_s6 }
 0x11e   : > { %s3310_s17 = scalar_lea.hbm %s625_s11, 16  ;;  %p3313_p3 = scmp.lt.s32.totalorder %s625_s11, %s4181_s1 }
 0x11f   : > { %p3311_p11 = scmp.ne.s32.totalorder %s625_s11, %s3310_s17  ;;  %p3314_p4 = scmp.lt.s32.totalorder %s3956_s7, %s3310_s17 }
 0x121   : > { %p3315_p1 = por %p3314_p4, %p3313_p3 }
 0x123   : > { %p3316_p5 = pnand %p3315_p1, %p3311_p11 }
 0x125   : > { %3319 = shalt.err (!%p3316_p5)  }
 0x126   : > { %s3320_s22 = scalar_lea.vmem %s636_s6, 16  ;;  %p3325_p0 = scmp.lt.s32.totalorder %s636_s6, %s3939_s0 }
 0x127   : > { %p3321_p2 = scmp.ne.s32.totalorder %s636_s6, %s3320_s22  ;;  %p3326_p10 = scmp.lt.s32.totalorder %s3965_s29, %s3320_s22 }
 0x129   : > { %p3327_p6 = por %p3326_p10, %p3325_p0 }
 0x12b   : > { %p3328_p8 = pnand %p3327_p6, %p3321_p2 }
 0x12d   : > { %3331 = shalt.err (!%p3328_p8)  }
 0x12e   : > { %638 = dma.hbm_to_vmem [thread:$0]  %s625_s11, 16, %s636_s6, [#allocation4 + $0x3] }
 0x12f   : > { %s3590_s10 = smov [#allocation2 + $0x4]   ;;  %s2416_s12 = sld [smem:[#allocation6 + $0x5]] }
 0x130   : > { %s651_s16 = sshll.u32 %s3590_s10, 4  ;;  %s3591_s3 = smov [#allocation2 + $0x5]   ;;  %s652_s16 = int_to_ptr.vmem [resolvable:$true] %s651_s16 }
 0x131   : > { %s667_s5 = sshll.u32 %s3591_s3, 4  ;;  %s4008_s26 = sld [smem:[#allocation6 + $0x6]]  ;;  %s4010_s5 = int_to_ptr.vmem [resolvable:$true] %s667_s5 }
 0x132   : > { %s2415_s24 = sshll.u32 %s2414_s21, 4 }
 0x133   : > { %s641_s17 = scalar_lea.hbm %s4181_s1, %s2415_s24 }
 0x134   : > { %s3332_s4 = scalar_lea.hbm %s641_s17, 16  ;;  %p3335_p7 = scmp.lt.s32.totalorder %s641_s17, %s4181_s1 }
 0x135   : > { %p3333_p9 = scmp.ne.s32.totalorder %s641_s17, %s3332_s4  ;;  %p3336_p13 = scmp.lt.s32.totalorder %s3956_s7, %s3332_s4 }
 0x137   : > { %p3337_p12 = por %p3336_p13, %p3335_p7 }
 0x139   : > { %p3338_p11 = pnand %p3337_p12, %p3333_p9 }
 0x13b   : > { %3341 = shalt.err (!%p3338_p11)  }
 0x13c   : > { %s3342_s6 = scalar_lea.vmem %s652_s16, 16  ;;  %p3347_p4 = scmp.lt.s32.totalorder %s652_s16, %s3939_s0 }
 0x13d   : > { %p3343_p3 = scmp.ne.s32.totalorder %s652_s16, %s3342_s6  ;;  %p3348_p1 = scmp.lt.s32.totalorder %s3965_s29, %s3342_s6 }
 0x13f   : > { %p3349_p5 = por %p3348_p1, %p3347_p4 }
 0x141   : > { %p3350_p2 = pnand %p3349_p5, %p3343_p3 }
 0x143   : > { %3353 = shalt.err (!%p3350_p2)  }
 0x144   : > { %654 = dma.hbm_to_vmem [thread:$0]  %s641_s17, 16, %s652_s16, [#allocation4 + $0x4] }
 0x145   : > { %s2417_s21 = sshll.u32 %s2416_s12, 4  ;;  %s3592_s22 = smov [#allocation2 + $0x6]  }
 0x146   : > { %s683_s10 = sshll.u32 %s3592_s22, 4  ;;  %s657_s9 = scalar_lea.hbm %s4181_s1, %s2417_s21  ;;  %s4024_s10 = int_to_ptr.vmem [resolvable:$true] %s683_s10 }
 0x147   : > { %s3354_s25 = scalar_lea.hbm %s657_s9, 16  ;;  %p3357_p10 = scmp.lt.s32.totalorder %s657_s9, %s4181_s1 }
 0x148   : > { %p3355_p0 = scmp.ne.s32.totalorder %s657_s9, %s3354_s25  ;;  %p3358_p6 = scmp.lt.s32.totalorder %s3956_s7, %s3354_s25 }
 0x14a   : > { %p3359_p8 = por %p3358_p6, %p3357_p10 }
 0x14c   : > { %p3360_p9 = pnand %p3359_p8, %p3355_p0 }
 0x14e   : > { %3363 = shalt.err (!%p3360_p9)  }
 0x14f   : > { %s3364_s16 = scalar_lea.vmem %s4010_s5, 16  ;;  %p3369_p13 = scmp.lt.s32.totalorder %s4010_s5, %s3939_s0 }
 0x150   : > { %p3365_p7 = scmp.ne.s32.totalorder %s4010_s5, %s3364_s16  ;;  %p3370_p12 = scmp.lt.s32.totalorder %s3965_s29, %s3364_s16 }
 0x152   : > { %p3371_p11 = por %p3370_p12, %p3369_p13 }
 0x154   : > { %p3372_p3 = pnand %p3371_p11, %p3365_p7 }
 0x156   : > { %3375 = shalt.err (!%p3372_p3)  }
 0x157   : > { %670 = dma.hbm_to_vmem [thread:$0]  %s657_s9, 16, %s4010_s5, [#allocation4 + $0x5] }
 0x158   : > { %s2419_s12 = sshll.u32 %s4008_s26, 4  ;;  %s2420_s17 = sld [smem:[#allocation6 + $0x7]] }
 0x159   : > { %s673_s21 = scalar_lea.hbm %s4181_s1, %s2419_s12 }
 0x15a   : > { %s3376_s22 = scalar_lea.hbm %s673_s21, 16  ;;  %p3379_p1 = scmp.lt.s32.totalorder %s673_s21, %s4181_s1 }
 0x15b   : > { %p3377_p4 = scmp.ne.s32.totalorder %s673_s21, %s3376_s22  ;;  %p3380_p5 = scmp.lt.s32.totalorder %s3956_s7, %s3376_s22 }
 0x15d   : > { %p3381_p2 = por %p3380_p5, %p3379_p1 }
 0x15f   : > { %p3382_p0 = pnand %p3381_p2, %p3377_p4 }
 0x161   : > { %3385 = shalt.err (!%p3382_p0)  }
 0x162   : > { %s3386_s5 = scalar_lea.vmem %s4024_s10, 16  ;;  %p3391_p6 = scmp.lt.s32.totalorder %s4024_s10, %s3939_s0 }
 0x163   : > { %p3387_p10 = scmp.ne.s32.totalorder %s4024_s10, %s3386_s5  ;;  %p3392_p8 = scmp.lt.s32.totalorder %s3965_s29, %s3386_s5 }
 0x165   : > { %p3393_p9 = por %p3392_p8, %p3391_p6 }
 0x167   : > { %p3394_p7 = pnand %p3393_p9, %p3387_p10 }
 0x169   : > { %3397 = shalt.err (!%p3394_p7)  }
 0x16a   : > { %686 = dma.hbm_to_vmem [thread:$0]  %s673_s21, 16, %s4024_s10, [#allocation4 + $0x6] }
 0x16b   : > { %s3593_s26 = smov [#allocation2 + $0x7]   ;;  %s2421_s25 = sshll.u32 %s2420_s17, 4 }
 0x16c   : > { %s699_s9 = sshll.u32 %s3593_s26, 4  ;;  %s689_s16 = scalar_lea.hbm %s4181_s1, %s2421_s25  ;;  %s700_s9 = int_to_ptr.vmem [resolvable:$true] %s699_s9 }
 0x16d   : > { %s3398_s12 = scalar_lea.hbm %s689_s16, 16  ;;  %p3401_p12 = scmp.lt.s32.totalorder %s689_s16, %s4181_s1 }
 0x16e   : > { %p3399_p13 = scmp.ne.s32.totalorder %s689_s16, %s3398_s12  ;;  %p3402_p11 = scmp.lt.s32.totalorder %s3956_s7, %s3398_s12 }
 0x170   : > { %p3403_p3 = por %p3402_p11, %p3401_p12 }
 0x172   : > { %p3404_p4 = pnand %p3403_p3, %p3399_p13 }
 0x174   : > { %3407 = shalt.err (!%p3404_p4)  }
 0x175   : > { %s3408_s22 = scalar_lea.vmem %s700_s9, 16  ;;  %p3413_p5 = scmp.lt.s32.totalorder %s700_s9, %s3939_s0 }
 0x176   : > { %p3409_p1 = scmp.ne.s32.totalorder %s700_s9, %s3408_s22  ;;  %p3414_p2 = scmp.lt.s32.totalorder %s3965_s29, %s3408_s22 }
 0x178   : > { %p3415_p0 = por %p3414_p2, %p3413_p5 }
 0x17a   : > { %p3416_p10 = pnand %p3415_p0, %p3409_p1 }
 0x17c   : > { %3419 = shalt.err (!%p3416_p10)  }
 0x17d   : > { %702 = dma.hbm_to_vmem [thread:$0]  %s689_s16, 16, %s700_s9, [#allocation4 + $0x7] }
 0x17e   : > { %3532 = dma.done.wait [#allocation4], 16 }
 0x17f   : > { %3533 = vsyncadd [#allocation4], 4294967280 }
 0x180   : > { %3534 = dma.done.wait [#allocation4 + $0x1], 16 }
 0x181   : > { %3535 = vsyncadd [#allocation4 + $0x1], 4294967280 }
 0x182   : > { %3536 = dma.done.wait [#allocation4 + $0x2], 16 }
 0x183   : > { %3537 = vsyncadd [#allocation4 + $0x2], 4294967280 }
 0x184   : > { %3538 = dma.done.wait [#allocation4 + $0x3], 16 }
 0x185   : > { %3539 = vsyncadd [#allocation4 + $0x3], 4294967280 }
 0x186   : > { %3540 = dma.done.wait [#allocation4 + $0x4], 16 }
 0x187   : > { %3541 = vsyncadd [#allocation4 + $0x4], 4294967280 }
 0x188   : > { %3542 = dma.done.wait [#allocation4 + $0x5], 16 }
 0x189   : > { %3543 = vsyncadd [#allocation4 + $0x5], 4294967280 }
 0x18a   : > { %3544 = dma.done.wait [#allocation4 + $0x6], 16 }
 0x18b   : > { %3545 = vsyncadd [#allocation4 + $0x6], 4294967280 }
 0x18c   : > { %3546 = dma.done.wait [#allocation4 + $0x7], 16 }
 0x18d   : > { %3547 = vsyncadd [#allocation4 + $0x7], 4294967280  ;;  %v3594_v0 = vmov 0   ;;  %v2746_v1 = vld [vmem:[#allocation12 + $0xe4] ss:$16 sps:$4 sm:$0xff]  }
 0x18e   : > { %981 = vmatprep.mubr.bf16.mxu0 %v3594_v0  ;;  %1022 = vmatprep.mubr.bf16.mxu1 %v3594_v0  ;;  %v2748_v2 = vld [vmem:[#allocation12 + $0xec] ss:$16 sps:$4 sm:$0xff]   ;;  %v2750_v3 = vld [vmem:[#allocation12 + $0xe0] ss:$16 sps:$4 sm:$0xff]   ;;  %v2751_v4 = vld [vmem:[#allocation12 + $0xe8] ss:$16 sps:$4 sm:$0xff]  }
 0x18f   : > { %949 = vmatprep.subr.bf16.mxu0 %v2746_v1  ;;  %990 = vmatprep.subr.bf16.mxu1 %v2748_v2  ;;  %v2752_v5 = vld [vmem:[#allocation12 + $0xc4] ss:$16 sps:$4 sm:$0xff]   ;;  %v2754_v6 = vld [vmem:[#allocation12 + $0xcc] ss:$16 sps:$4 sm:$0xff]   ;;  %v2756_v7 = vld [vmem:[#allocation12 + $0xc0] ss:$16 sps:$4 sm:$0xff]  }
 0x190   : > { %950 = vmatpush1.bf16.msra.mxu0 %v2750_v3  ;;  %991 = vmatpush1.bf16.msra.mxu1 %v2751_v4  ;;  %v2757_v8 = vld [vmem:[#allocation12 + $0xc8] ss:$16 sps:$4 sm:$0xff]   ;;  %v2758_v9 = vld [vmem:[#allocation12 + $0xa4] ss:$16 sps:$4 sm:$0xff]   ;;  %v2760_v10 = vld [vmem:[#allocation12 + $0xac] ss:$16 sps:$4 sm:$0xff]  }
 0x191   : > { %951 = vmatprep.subr.bf16.mxu0 %v2752_v5  ;;  %992 = vmatprep.subr.bf16.mxu1 %v2754_v6  ;;  %v2762_v11 = vld [vmem:[#allocation12 + $0xa0] ss:$16 sps:$4 sm:$0xff]   ;;  %v2763_v12 = vld [vmem:[#allocation12 + $0xa8] ss:$16 sps:$4 sm:$0xff]   ;;  %v2764_v13 = vld [vmem:[#allocation12 + $0x84] ss:$16 sps:$4 sm:$0xff]  }
 0x192   : > { %v2766_v14 = vld [vmem:[#allocation12 + $0x8c] ss:$16 sps:$4 sm:$0xff]   ;;  %v2768_v15 = vld [vmem:[#allocation12 + $0x80] ss:$16 sps:$4 sm:$0xff]   ;;  %v2769_v16 = vld [vmem:[#allocation12 + $0x88] ss:$16 sps:$4 sm:$0xff]  }
 0x193   : > { %v2770_v17 = vld [vmem:[#allocation12 + $0x64] ss:$16 sps:$4 sm:$0xff]   ;;  %v2772_v18 = vld [vmem:[#allocation12 + $0x6c] ss:$16 sps:$4 sm:$0xff]   ;;  %v2774_v19 = vld [vmem:[#allocation12 + $0x60] ss:$16 sps:$4 sm:$0xff]  }
 0x194   : > { %952 = vmatpush1.bf16.msra.mxu0 %v2756_v7  ;;  %993 = vmatpush1.bf16.msra.mxu1 %v2757_v8  ;;  %v2775_v20 = vld [vmem:[#allocation12 + $0x68] ss:$16 sps:$4 sm:$0xff]   ;;  %v2776_v21 = vld [vmem:[#allocation12 + $0x44] ss:$16 sps:$4 sm:$0xff]   ;;  %v2778_v22 = vld [vmem:[#allocation12 + $0x4c] ss:$16 sps:$4 sm:$0xff]  }
 0x195   : > { %953 = vmatprep.subr.bf16.mxu0 %v2758_v9  ;;  %994 = vmatprep.subr.bf16.mxu1 %v2760_v10  ;;  %v2780_v23 = vld [vmem:[#allocation12 + $0x40] ss:$16 sps:$4 sm:$0xff]   ;;  %v2781_v24 = vld [vmem:[#allocation12 + $0x48] ss:$16 sps:$4 sm:$0xff]   ;;  %v2782_v25 = vld [vmem:[#allocation12 + $0x24] ss:$16 sps:$4 sm:$0xff]  }
 0x196   : > { %v2784_v26 = vld [vmem:[#allocation12 + $0x2c] ss:$16 sps:$4 sm:$0xff]   ;;  %v2786_v27 = vld [vmem:[#allocation12 + $0x20] ss:$16 sps:$4 sm:$0xff]   ;;  %v2787_v28 = vld [vmem:[#allocation12 + $0x28] ss:$16 sps:$4 sm:$0xff]  }
 0x197   : > { %v2788_v29 = vld [vmem:[#allocation12 + $0x4] ss:$16 sps:$4 sm:$0xff]   ;;  %v2790_v30 = vld [vmem:[#allocation12 + $0xc] ss:$16 sps:$4 sm:$0xff]   ;;  %v2792_v31 = vld [vmem:[#allocation12] ss:$16 sps:$4 sm:$0xff]  }
 0x198   : > { %954 = vmatpush1.bf16.msra.mxu0 %v2762_v11  ;;  %995 = vmatpush1.bf16.msra.mxu1 %v2763_v12  ;;  %v2793_v32 = vld [vmem:[#allocation12 + $0x8] ss:$16 sps:$4 sm:$0xff]   ;;  %v2796_v34 = vld [vmem:[#allocation10 + $0xe4] ss:$16 sps:$4 sm:$0xff]   ;;  %v2799_v35 = vld [vmem:[#allocation10 + $0xec] ss:$16 sps:$4 sm:$0xff]  }
 0x199   : > { %955 = vmatprep.subr.bf16.mxu0 %v2764_v13  ;;  %996 = vmatprep.subr.bf16.mxu1 %v2766_v14  ;;  %v722_v33 = vld [vmem:[%s4182_s2] sm:$0xff]  ;;  %v2794_v37 = vld [vmem:[#allocation10 + $0xe0] ss:$16 sps:$4 sm:$0xff]   ;;  %v2805_v40 = vld [vmem:[#allocation10 + $0xcc] ss:$16 sps:$4 sm:$0xff]  }
 0x19a   : > { %v756_v36 = vpack.c.bf16 %v722_v33, %v722_v33  ;;  %v2797_v38 = vld [vmem:[#allocation10 + $0xe8] ss:$16 sps:$4 sm:$0xff]   ;;  %v2802_v39 = vld [vmem:[#allocation10 + $0xc4] ss:$16 sps:$4 sm:$0xff]   ;;  %v2800_v41 = vld [vmem:[#allocation10 + $0xc0] ss:$16 sps:$4 sm:$0xff]  }
 0x19b   : > { %v2803_v42 = vld [vmem:[#allocation10 + $0xc8] ss:$16 sps:$4 sm:$0xff]   ;;  %v2808_v43 = vld [vmem:[#allocation10 + $0xa4] ss:$16 sps:$4 sm:$0xff]   ;;  %v2811_v44 = vld [vmem:[#allocation10 + $0xac] ss:$16 sps:$4 sm:$0xff]  }
 0x19c   : > { %956 = vmatpush1.bf16.msra.mxu0 %v2768_v15  ;;  %997 = vmatpush1.bf16.msra.mxu1 %v2769_v16  ;;  %v2806_v45 = vld [vmem:[#allocation10 + $0xa0] ss:$16 sps:$4 sm:$0xff]   ;;  %v2809_v46 = vld [vmem:[#allocation10 + $0xa8] ss:$16 sps:$4 sm:$0xff]   ;;  %v2814_v47 = vld [vmem:[#allocation10 + $0x84] ss:$16 sps:$4 sm:$0xff]  }
 0x19d   : > { %957 = vmatprep.subr.bf16.mxu0 %v2770_v17  ;;  %998 = vmatprep.subr.bf16.mxu1 %v2772_v18  ;;  %v2817_v48 = vld [vmem:[#allocation10 + $0x8c] ss:$16 sps:$4 sm:$0xff]   ;;  %v2812_v49 = vld [vmem:[#allocation10 + $0x80] ss:$16 sps:$4 sm:$0xff]   ;;  %v2815_v50 = vld [vmem:[#allocation10 + $0x88] ss:$16 sps:$4 sm:$0xff]  }
 0x19e   : > { %v2820_v51 = vld [vmem:[#allocation10 + $0x64] ss:$16 sps:$4 sm:$0xff]   ;;  %v2823_v52 = vld [vmem:[#allocation10 + $0x6c] ss:$16 sps:$4 sm:$0xff]   ;;  %v2818_v53 = vld [vmem:[#allocation10 + $0x60] ss:$16 sps:$4 sm:$0xff]  }
 0x19f   : > { %v2821_v54 = vld [vmem:[#allocation10 + $0x68] ss:$16 sps:$4 sm:$0xff]   ;;  %v2826_v55 = vld [vmem:[#allocation10 + $0x44] ss:$16 sps:$4 sm:$0xff]   ;;  %v2829_v56 = vld [vmem:[#allocation10 + $0x4c] ss:$16 sps:$4 sm:$0xff]  }
 0x1a0   : > { %958 = vmatpush1.bf16.msra.mxu0 %v2774_v19  ;;  %999 = vmatpush1.bf16.msra.mxu1 %v2775_v20  ;;  %v2824_v57 = vld [vmem:[#allocation10 + $0x40] ss:$16 sps:$4 sm:$0xff]   ;;  %v2827_v58 = vld [vmem:[#allocation10 + $0x48] ss:$16 sps:$4 sm:$0xff]   ;;  %v2832_v59 = vld [vmem:[#allocation10 + $0x24] ss:$16 sps:$4 sm:$0xff]  }
 0x1a1   : > { %959 = vmatprep.subr.bf16.mxu0 %v2776_v21  ;;  %1000 = vmatprep.subr.bf16.mxu1 %v2778_v22  ;;  %v2835_v60 = vld [vmem:[#allocation10 + $0x2c] ss:$16 sps:$4 sm:$0xff]   ;;  %v2830_v61 = vld [vmem:[#allocation10 + $0x20] ss:$16 sps:$4 sm:$0xff]   ;;  %v2833_v62 = vld [vmem:[#allocation10 + $0x28] ss:$16 sps:$4 sm:$0xff]  }
 0x1a2   : > { %v2838_v63 = vld [vmem:[#allocation10 + $0x4] ss:$16 sps:$4 sm:$0xff]   ;;  %v2841_v1 = vld [vmem:[#allocation10 + $0xc] ss:$16 sps:$4 sm:$0xff]   ;;  %v2836_v2 = vld [vmem:[#allocation10] ss:$16 sps:$4 sm:$0xff]  }
 0x1a3   : > { %v2839_v3 = vld [vmem:[#allocation10 + $0x8] ss:$16 sps:$4 sm:$0xff]   ;;  %v2842_v6 = vld [vmem:[#allocation16 + $0xe0] ss:$16 sps:$4 sm:$0xff]   ;;  %v2848_v9 = vld [vmem:[#allocation16 + $0xe8] ss:$16 sps:$4 sm:$0xff]  }
 0x1a4   : > { %960 = vmatpush1.bf16.msra.mxu0 %v2780_v23  ;;  %1001 = vmatpush1.bf16.msra.mxu1 %v2781_v24  ;;  %v720_v4 = vld [vmem:[#allocation2] sm:$0xff]  ;;  %v2850_v10 = vld [vmem:[#allocation16 + $0xec] ss:$16 sps:$4 sm:$0xff]   ;;  %v2854_v15 = vld [vmem:[#allocation16 + $0xc8] ss:$16 sps:$4 sm:$0xff]  }
 0x1a5   : > { %961 = vmatprep.subr.bf16.mxu0 %v2782_v25  ;;  %1002 = vmatprep.subr.bf16.mxu1 %v2784_v26  ;;  %v721_v5 = vpack.c.bf16 %v720_v4, %v720_v4  ;;  %v2844_v7 = vld [vmem:[#allocation16 + $0xe4] ss:$16 sps:$4 sm:$0xff]   ;;  %v2845_v11 = vld [vmem:[#allocation16 + $0xc0] ss:$16 sps:$4 sm:$0xff]   ;;  %v2856_v14 = vld [vmem:[#allocation16 + $0xcc] ss:$16 sps:$4 sm:$0xff]  }
 0x1a6   : > { %v2847_v8 = vld [vmem:[#allocation16 + $0xc4] ss:$16 sps:$4 sm:$0xff]   ;;  %v2851_v13 = vld [vmem:[#allocation16 + $0xa0] ss:$16 sps:$4 sm:$0xff]   ;;  %v2862_v18 = vld [vmem:[#allocation16 + $0xac] ss:$16 sps:$4 sm:$0xff]  }
 0x1a7   : > { %v2853_v12 = vld [vmem:[#allocation16 + $0xa4] ss:$16 sps:$4 sm:$0xff]   ;;  %v2857_v17 = vld [vmem:[#allocation16 + $0x80] ss:$16 sps:$4 sm:$0xff]   ;;  %v2860_v19 = vld [vmem:[#allocation16 + $0xa8] ss:$16 sps:$4 sm:$0xff]  }
 0x1a8   : > { %962 = vmatpush1.bf16.msra.mxu0 %v2786_v27  ;;  %1003 = vmatpush1.bf16.msra.mxu1 %v2787_v28  ;;  %v2859_v16 = vld [vmem:[#allocation16 + $0x84] ss:$16 sps:$4 sm:$0xff]   ;;  %v2863_v21 = vld [vmem:[#allocation16 + $0x60] ss:$16 sps:$4 sm:$0xff]   ;;  %v2868_v22 = vld [vmem:[#allocation16 + $0x8c] ss:$16 sps:$4 sm:$0xff]  }
 0x1a9   : > { %963 = vmatprep.subr.bf16.mxu0 %v2788_v29  ;;  %1004 = vmatprep.subr.bf16.mxu1 %v2790_v30  ;;  %v2865_v20 = vld [vmem:[#allocation16 + $0x64] ss:$16 sps:$4 sm:$0xff]   ;;  %v2866_v23 = vld [vmem:[#allocation16 + $0x88] ss:$16 sps:$4 sm:$0xff]   ;;  %v2869_v25 = vld [vmem:[#allocation16 + $0x40] ss:$16 sps:$4 sm:$0xff]  }
 0x1aa   : > { %v2871_v24 = vld [vmem:[#allocation16 + $0x44] ss:$16 sps:$4 sm:$0xff]   ;;  %v2874_v26 = vld [vmem:[#allocation16 + $0x6c] ss:$16 sps:$4 sm:$0xff]   ;;  %v2872_v27 = vld [vmem:[#allocation16 + $0x68] ss:$16 sps:$4 sm:$0xff]  }
 0x1ab   : > { %v2877_v28 = vld [vmem:[#allocation16 + $0x24] ss:$16 sps:$4 sm:$0xff]   ;;  %v2875_v29 = vld [vmem:[#allocation16 + $0x20] ss:$16 sps:$4 sm:$0xff]   ;;  %v2880_v30 = vld [vmem:[#allocation16 + $0x4c] ss:$16 sps:$4 sm:$0xff]  }
 0x1ac   : > { %964 = vmatpush1.bf16.msra.mxu0 %v2792_v31  ;;  %1005 = vmatpush1.bf16.msra.mxu1 %v2793_v32  ;;  %v2878_v31 = vld [vmem:[#allocation16 + $0x48] ss:$16 sps:$4 sm:$0xff]   ;;  %v2883_v32 = vld [vmem:[#allocation16 + $0x4] ss:$16 sps:$4 sm:$0xff]   ;;  %v2881_v33 = vld [vmem:[#allocation16] ss:$16 sps:$4 sm:$0xff]  }
 0x1ad   : > { %1191 = vmatprep.subr.bf16.mxu0 %v2796_v34  ;;  %1232 = vmatprep.subr.bf16.mxu1 %v2799_v35  ;;  %v2886_v34 = vld [vmem:[#allocation16 + $0x2c] ss:$16 sps:$4 sm:$0xff]   ;;  %v2884_v35 = vld [vmem:[#allocation16 + $0x28] ss:$16 sps:$4 sm:$0xff]   ;;  %v2934_v4 = vld [vmem:[#allocation15 + $0x4] ss:$16 sps:$4 sm:$0xff]  }
 0x1af   : > { %982 = vmatmul.mubr.bf16.vlgmr.msra.gmra.mxu0 %v756_v36  ;;  %1023 = vmatmul.mubr.bf16.vlgmr.msra.gmra.mxu1 %v756_v36  ;;  %v2489_v36 = vld [vmem:[%s4182_s2 + $0x8] sm:$0xff] }
 0x1b0   : > { %1192 = vmatpush1.bf16.msra.mxu0 %v2794_v37  ;;  %1233 = vmatpush1.bf16.msra.mxu1 %v2797_v38  ;;  %v1362_v37 = vpack.c.bf16 %v2489_v36, %v2489_v36  ;;  %v2889_v38 = vld [vmem:[#allocation16 + $0xc] ss:$16 sps:$4 sm:$0xff]  }
 0x1b1   : > { %1193 = vmatprep.subr.bf16.mxu0 %v2802_v39  ;;  %1234 = vmatprep.subr.bf16.mxu1 %v2805_v40  ;;  %v2887_v39 = vld [vmem:[#allocation16 + $0x8] ss:$16 sps:$4 sm:$0xff]   ;;  %v2892_v40 = vld [vmem:[#allocation15 + $0xe4] ss:$16 sps:$4 sm:$0xff]  }
 0x1b2   : > { %1223 = vmatprep.mubr.bf16.mxu0 %v3594_v0  ;;  %1264 = vmatprep.mubr.bf16.mxu1 %v3594_v0 }
 0x1b4   : > { %1194 = vmatpush1.bf16.msra.mxu0 %v2800_v41  ;;  %1235 = vmatpush1.bf16.msra.mxu1 %v2803_v42  ;;  %v2895_v41 = vld [vmem:[#allocation15 + $0xec] ss:$16 sps:$4 sm:$0xff]   ;;  %v2890_v42 = vld [vmem:[#allocation15 + $0xe0] ss:$16 sps:$4 sm:$0xff]  }
 0x1b5   : > { %1195 = vmatprep.subr.bf16.mxu0 %v2808_v43  ;;  %1236 = vmatprep.subr.bf16.mxu1 %v2811_v44  ;;  %v2893_v43 = vld [vmem:[#allocation15 + $0xe8] ss:$16 sps:$4 sm:$0xff]   ;;  %v2898_v44 = vld [vmem:[#allocation15 + $0xc4] ss:$16 sps:$4 sm:$0xff]  }
 0x1b8   : > { %1196 = vmatpush1.bf16.msra.mxu0 %v2806_v45  ;;  %1237 = vmatpush1.bf16.msra.mxu1 %v2809_v46  ;;  %v2901_v45 = vld [vmem:[#allocation15 + $0xcc] ss:$16 sps:$4 sm:$0xff]   ;;  %v2896_v46 = vld [vmem:[#allocation15 + $0xc0] ss:$16 sps:$4 sm:$0xff]  }
 0x1b9   : > { %1197 = vmatprep.subr.bf16.mxu0 %v2814_v47  ;;  %1238 = vmatprep.subr.bf16.mxu1 %v2817_v48  ;;  %v2899_v47 = vld [vmem:[#allocation15 + $0xc8] ss:$16 sps:$4 sm:$0xff]   ;;  %v2904_v48 = vld [vmem:[#allocation15 + $0xa4] ss:$16 sps:$4 sm:$0xff]  }
 0x1bc   : > { %1198 = vmatpush1.bf16.msra.mxu0 %v2812_v49  ;;  %1239 = vmatpush1.bf16.msra.mxu1 %v2815_v50  ;;  %v2907_v49 = vld [vmem:[#allocation15 + $0xac] ss:$16 sps:$4 sm:$0xff]   ;;  %v2902_v50 = vld [vmem:[#allocation15 + $0xa0] ss:$16 sps:$4 sm:$0xff]  }
 0x1bd   : > { %1199 = vmatprep.subr.bf16.mxu0 %v2820_v51  ;;  %1240 = vmatprep.subr.bf16.mxu1 %v2823_v52  ;;  %v2905_v51 = vld [vmem:[#allocation15 + $0xa8] ss:$16 sps:$4 sm:$0xff]   ;;  %v2910_v52 = vld [vmem:[#allocation15 + $0x84] ss:$16 sps:$4 sm:$0xff]  }
 0x1c0   : > { %1200 = vmatpush1.bf16.msra.mxu0 %v2818_v53  ;;  %1241 = vmatpush1.bf16.msra.mxu1 %v2821_v54  ;;  %v2913_v53 = vld [vmem:[#allocation15 + $0x8c] ss:$16 sps:$4 sm:$0xff]   ;;  %v2908_v54 = vld [vmem:[#allocation15 + $0x80] ss:$16 sps:$4 sm:$0xff]  }
 0x1c1   : > { %1201 = vmatprep.subr.bf16.mxu0 %v2826_v55  ;;  %1242 = vmatprep.subr.bf16.mxu1 %v2829_v56  ;;  %v2911_v55 = vld [vmem:[#allocation15 + $0x88] ss:$16 sps:$4 sm:$0xff]   ;;  %v2919_v56 = vld [vmem:[#allocation15 + $0x6c] ss:$16 sps:$4 sm:$0xff]  }
 0x1c4   : > { %1202 = vmatpush1.bf16.msra.mxu0 %v2824_v57  ;;  %1243 = vmatpush1.bf16.msra.mxu1 %v2827_v58  ;;  %v2914_v57 = vld [vmem:[#allocation15 + $0x60] ss:$16 sps:$4 sm:$0xff]   ;;  %v2917_v58 = vld [vmem:[#allocation15 + $0x68] ss:$16 sps:$4 sm:$0xff]  }
 0x1c5   : > { %1203 = vmatprep.subr.bf16.mxu0 %v2832_v59  ;;  %1244 = vmatprep.subr.bf16.mxu1 %v2835_v60  ;;  %v2922_v59 = vld [vmem:[#allocation15 + $0x44] ss:$16 sps:$4 sm:$0xff]   ;;  %v2925_v60 = vld [vmem:[#allocation15 + $0x4c] ss:$16 sps:$4 sm:$0xff]  }
 0x1c8   : > { %1204 = vmatpush1.bf16.msra.mxu0 %v2830_v61  ;;  %1245 = vmatpush1.bf16.msra.mxu1 %v2833_v62  ;;  %v2920_v61 = vld [vmem:[#allocation15 + $0x40] ss:$16 sps:$4 sm:$0xff]   ;;  %v2923_v62 = vld [vmem:[#allocation15 + $0x48] ss:$16 sps:$4 sm:$0xff]  }
 0x1c9   : > { %1205 = vmatprep.subr.bf16.mxu0 %v2838_v63  ;;  %1246 = vmatprep.subr.bf16.mxu1 %v2841_v1  ;;  %v2928_v63 = vld [vmem:[#allocation15 + $0x24] ss:$16 sps:$4 sm:$0xff]   ;;  %v2931_v1 = vld [vmem:[#allocation15 + $0x2c] ss:$16 sps:$4 sm:$0xff]  }
 0x1cc   : > { %1206 = vmatpush1.bf16.msra.mxu0 %v2836_v2  ;;  %1247 = vmatpush1.bf16.msra.mxu1 %v2839_v3  ;;  %v2926_v2 = vld [vmem:[#allocation15 + $0x20] ss:$16 sps:$4 sm:$0xff]   ;;  %v2929_v3 = vld [vmem:[#allocation15 + $0x28] ss:$16 sps:$4 sm:$0xff]  }
 0x1cd   : > { %1555 = vmatprep.subr.bf16.mxu0 %v2844_v7  ;;  %1596 = vmatprep.subr.bf16.mxu1 %v2850_v10  ;;  %v2935_v7 = vld [vmem:[#allocation15 + $0x8] ss:$16 sps:$4 sm:$0xff]  }
 0x1cf   : > { %1224 = vmatmul.mubr.bf16.vlgmr.msra.gmra.mxu0 %v721_v5  ;;  %1265 = vmatmul.mubr.bf16.vlgmr.msra.gmra.mxu1 %v721_v5  ;;  %v2937_v5 = vld [vmem:[#allocation15 + $0xc] ss:$16 sps:$4 sm:$0xff]  }
 0x1d0   : > { %1587 = vmatprep.mubr.bf16.mxu0 %v3594_v0  ;;  %1628 = vmatprep.mubr.bf16.mxu1 %v3594_v0 }
 0x1d1   : > { %1556 = vmatpush1.bf16.msra.mxu0 %v2842_v6  ;;  %1597 = vmatpush1.bf16.msra.mxu1 %v2848_v9  ;;  %v2932_v6 = vld [vmem:[#allocation15] ss:$16 sps:$4 sm:$0xff]  }
 0x1d2   : > { %1557 = vmatprep.subr.bf16.mxu0 %v2847_v8  ;;  %1598 = vmatprep.subr.bf16.mxu1 %v2856_v14 }
 0x1d5   : > { %1558 = vmatpush1.bf16.msra.mxu0 %v2845_v11  ;;  %1599 = vmatpush1.bf16.msra.mxu1 %v2854_v15 }
 0x1d6   : > { %1559 = vmatprep.subr.bf16.mxu0 %v2853_v12  ;;  %1600 = vmatprep.subr.bf16.mxu1 %v2862_v18 }
 0x1d9   : > { %1560 = vmatpush1.bf16.msra.mxu0 %v2851_v13  ;;  %1601 = vmatpush1.bf16.msra.mxu1 %v2860_v19  ;;  %v1273_v19 = vld [vmem:[#allocation13] sm:$0xf] }
 0x1da   : > { %1561 = vmatprep.subr.bf16.mxu0 %v2859_v16  ;;  %1602 = vmatprep.subr.bf16.mxu1 %v2868_v22  ;;  %v1275_v16 = vlaneseq }
 0x1dd   : > { %1562 = vmatpush1.bf16.msra.mxu0 %v2857_v17  ;;  %1603 = vmatpush1.bf16.msra.mxu1 %v2866_v23  ;;  %v4073_v17 = vshrl.u32 %v1275_v16, 7 }
 0x1de   : > { %1563 = vmatprep.subr.bf16.mxu0 %v2865_v20  ;;  %1604 = vmatprep.subr.bf16.mxu1 %v2874_v26 }
 0x1df   : > { %v1277_v18 = vsub.s32 0, %v4073_v17  ;;  %v1281_v20 = vsub.s32 1, %v4073_v17 }
 0x1e1   : > { %1564 = vmatpush1.bf16.msra.mxu0 %v2863_v21  ;;  %1605 = vmatpush1.bf16.msra.mxu1 %v2872_v27  ;;  %v1278_v21 = vrot.slane %v1273_v19, %v1277_v18 }
 0x1e2   : > { %1565 = vmatprep.subr.bf16.mxu0 %v2871_v24  ;;  %1606 = vmatprep.subr.bf16.mxu1 %v2880_v30 }
 0x1e5   : > { %1566 = vmatpush1.bf16.msra.mxu0 %v2869_v25  ;;  %1607 = vmatpush1.bf16.msra.mxu1 %v2878_v31  ;;  %v1282_v25 = vrot.slane %v1273_v19, %v1281_v20 }
 0x1e6   : > { %1567 = vmatprep.subr.bf16.mxu0 %v2877_v28  ;;  %1608 = vmatprep.subr.bf16.mxu1 %v2886_v34  ;;  %v1285_v34 = vsub.s32 2, %v4073_v17 }
 0x1e9   : > { %1568 = vmatpush1.bf16.msra.mxu0 %v2875_v29  ;;  %1609 = vmatpush1.bf16.msra.mxu1 %v2884_v35 }
 0x1ea   : > { %1569 = vmatprep.subr.bf16.mxu0 %v2883_v32  ;;  %1610 = vmatprep.subr.bf16.mxu1 %v2889_v38 }
 0x1ed   : > { %1570 = vmatpush1.bf16.msra.mxu0 %v2881_v33  ;;  %1611 = vmatpush1.bf16.msra.mxu1 %v2887_v39  ;;  %v1286_v39 = vrot.slane %v1273_v19, %v1285_v34 }
 0x1ee   : > { %1797 = vmatprep.subr.bf16.mxu0 %v2892_v40  ;;  %1838 = vmatprep.subr.bf16.mxu1 %v2895_v41  ;;  %v1289_v40 = vsub.s32 3, %v4073_v17 }
 0x1f0   : > { %1588 = vmatmul.mubr.bf16.vlgmr.msra.gmra.mxu0 %v1362_v37  ;;  %1629 = vmatmul.mubr.bf16.vlgmr.msra.gmra.mxu1 %v1362_v37 }
 0x1f1   : > { %1829 = vmatprep.mubr.bf16.mxu0 %v3594_v0  ;;  %1798 = vmatpush1.bf16.msra.mxu0 %v2890_v42 }
 0x1f2   : > { %1839 = vmatpush1.bf16.msra.mxu1 %v2893_v43  ;;  %1870 = vmatprep.mubr.bf16.mxu1 %v3594_v0  ;;  %v2916_v0 = vld [vmem:[#allocation15 + $0x64] ss:$16 sps:$4 sm:$0xff]   ;;  %v1290_v43 = vrot.slane %v1273_v19, %v1289_v40 }
 0x1f3   : > { %1799 = vmatprep.subr.bf16.mxu0 %v2898_v44  ;;  %1840 = vmatprep.subr.bf16.mxu1 %v2901_v45 }
 0x1f5   : > { %1800 = vmatpush1.bf16.msra.mxu0 %v2896_v46 }
 0x1f6   : > { %1841 = vmatpush1.bf16.msra.mxu1 %v2899_v47  ;;  %1801 = vmatprep.subr.bf16.mxu0 %v2904_v48 }
 0x1f7   : > { %1842 = vmatprep.subr.bf16.mxu1 %v2907_v49 }
 0x1f9   : > { %1802 = vmatpush1.bf16.msra.mxu0 %v2902_v50 }
 0x1fa   : > { %1843 = vmatpush1.bf16.msra.mxu1 %v2905_v51  ;;  %1803 = vmatprep.subr.bf16.mxu0 %v2910_v52  ;;  %v723_v52 = vld [vmem:[#allocation7] sm:$0xff] }
 0x1fb   : > { %1844 = vmatprep.subr.bf16.mxu1 %v2913_v53 }
 0x1fd   : > { %1804 = vmatpush1.bf16.msra.mxu0 %v2908_v54 }
 0x1fe   : > { %1845 = vmatpush1.bf16.msra.mxu1 %v2911_v55  ;;  %1805 = vmatprep.subr.bf16.mxu0 %v2916_v0 }
 0x1ff   : > { %1846 = vmatprep.subr.bf16.mxu1 %v2919_v56 }
 0x201   : > { %1806 = vmatpush1.bf16.msra.mxu0 %v2914_v57 }
 0x202   : > { %1847 = vmatpush1.bf16.msra.mxu1 %v2917_v58  ;;  %1807 = vmatprep.subr.bf16.mxu0 %v2922_v59 }
 0x203   : > { %1848 = vmatprep.subr.bf16.mxu1 %v2925_v60 }
 0x205   : > { %1808 = vmatpush1.bf16.msra.mxu0 %v2920_v61 }
 0x206   : > { %1849 = vmatpush1.bf16.msra.mxu1 %v2923_v62  ;;  %1809 = vmatprep.subr.bf16.mxu0 %v2928_v63 }
 0x207   : > { %1850 = vmatprep.subr.bf16.mxu1 %v2931_v1 }
 0x209   : > { %1810 = vmatpush1.bf16.msra.mxu0 %v2926_v2 }
 0x20a   : > { %1851 = vmatpush1.bf16.msra.mxu1 %v2929_v3  ;;  %1811 = vmatprep.subr.bf16.mxu0 %v2934_v4 }
 0x20b   : > { %1852 = vmatprep.subr.bf16.mxu1 %v2937_v5 }
 0x20d   : > { %1812 = vmatpush1.bf16.msra.mxu0 %v2932_v6 }
 0x20e   : > { %1853 = vmatpush1.bf16.msra.mxu1 %v2935_v7  ;;  %v1879_v7 = vld [vmem:[#allocation18] sm:$0xf] }
 0x26f   : > { %v983_v8 = vpop.f32.mrf.mxu0  ;;  %v1024_v9 = vpop.f32.mrf.mxu1 }
 0x271   : > { %v985_v10 = vpop.f32.mrf.mxu0  ;;  %v1026_v11 = vpop.f32.mrf.mxu1 }
 0x273   : > { %v987_v12 = vpop.f32.mrf.mxu0  ;;  %v1028_v13 = vpop.f32.mrf.mxu1 }
 0x274   : > { %v1888_v12 = vrot.slane %v1879_v7, %v1281_v20  ;;  %v1896_v20 = vrot.slane %v1879_v7, %v1289_v40 }
 0x275   : > { %v988_v14 = vpop.f32.mrf.mxu0  ;;  %v1029_v15 = vpop.f32.mrf.mxu1 }
 0x28f   : > { %v1225_v22 = vpop.f32.mrf.mxu0  ;;  %v1266_v23 = vpop.f32.mrf.mxu1 }
 0x290   : > { %v1226_v24 = vadd.f32 %v1225_v22, %v983_v8  ;;  %v1267_v38 = vadd.f32 %v1266_v23, %v1024_v9  ;;  %v1884_v8 = vrot.slane %v1879_v7, %v1277_v18 }
 0x291   : > { %v1227_v26 = vpop.f32.mrf.mxu0  ;;  %v1268_v27 = vpop.f32.mrf.mxu1 }
 0x292   : > { %v1295_v28 = vadd.f32 %v1278_v21, %v1226_v24  ;;  %v1228_v29 = vadd.f32 %v1227_v26, %v985_v10  ;;  %v1297_v41 = vadd.f32 %v1286_v39, %v1267_v38  ;;  %v1269_v42 = vadd.f32 %v1268_v27, %v1026_v11  ;;  %v1329_v39 = vld [vmem:[#allocation7 + $0x8] sm:$0xff] }
 0x293   : > { %v1229_v30 = vpop.f32.mrf.mxu0  ;;  %v1270_v31 = vpop.f32.mrf.mxu1  ;;  %v1892_v27 = vrot.slane %v1879_v7, %v1285_v34 }
 0x294   : > { %v2486_v32 = vmul.f32 -1.442695, %v1295_v28  ;;  %v1296_v33 = vadd.f32 %v1282_v25, %v1228_v29  ;;  %v2488_v44 = vmul.f32 -1.442695, %v1297_v41  ;;  %v1298_v46 = vadd.f32 %v1290_v43, %v1269_v42 }
 0x295   : > { %v1230_v35 = vpop.f32.mrf.mxu0  ;;  %v1271_v36 = vpop.f32.mrf.mxu1 }
 0x296   : > { %2938 = vpow2.f32 %v2486_v32  ;;  %v2487_v37 = vmul.f32 -1.442695, %v1296_v33 }
 0x298   : > { %2940 = vpow2.f32 %v2487_v37 }
 0x299   : > { %2942 = vpow2.f32 %v2488_v44 }
 0x2a3   : > { %v2939_v45 = vpop.eup %2938 }
 0x2a4   : > { %v1308_v47 = vadd.f32 1.0, %v2939_v45 }
 0x2a5   : > { %v2941_v48 = vpop.eup %2940 }
 0x2a6   : > { %2944 = vrcp.f32 %v1308_v47  ;;  %v1309_v49 = vadd.f32 1.0, %v2941_v48  ;;  %v2943_v50 = vpop.eup %2942 }
 0x2a7   : > { %2946 = vtanh.f32 %v1298_v46  ;;  %v1310_v55 = vadd.f32 1.0, %v2943_v50 }
 0x2a8   : > { %2948 = vrcp.f32 %v1309_v49 }
 0x2a9   : > { %2950 = vrcp.f32 %v1310_v55 }
 0x2b0   : > { %v1589_v62 = vpop.f32.mrf.mxu0  ;;  %v1630_v3 = vpop.f32.mrf.mxu1 }
 0x2b2   : > { %v1591_v63 = vpop.f32.mrf.mxu0  ;;  %v1632_v4 = vpop.f32.mrf.mxu1 }
 0x2b3   : > { %v2945_v51 = vpop.eup %2944 }
 0x2b4   : > { %v2947_v53 = vpop.eup %2946  ;;  %v1593_v1 = vpop.f32.mrf.mxu0 }
 0x2b5   : > { %v2949_v54 = vpop.eup %2948  ;;  %v1319_v56 = vmul.f32 %v2947_v53, %v2945_v51  ;;  %v1634_v5 = vpop.f32.mrf.mxu1 }
 0x2b6   : > { %v1318_v0 = vmul.f32 %v2949_v54, %v723_v52  ;;  %v2951_v58 = vpop.eup %2950  ;;  %v1594_v2 = vpop.f32.mrf.mxu0 }
 0x2b7   : > { %v1635_v6 = vpop.f32.mrf.mxu1 }
 0x2b8   : > { %v1320_v57 = vadd.f32 %v1319_v56, %v1318_v0 }
 0x2ba   : > { %2952 = vtanh.f32 %v1320_v57  ;;  %1324 = vst [vmem:[#allocation25] sm:$0xff] %v1320_v57 }
 0x2c7   : > { %v2953_v59 = vpop.eup %2952 }
 0x2c8   : > { %v1322_v60 = vmul.f32 %v2953_v59, %v2951_v58 }
 0x2ca   : > { %1323 = vst [vmem:[#allocation23] sm:$0xff] %v1322_v60  ;;  %v1325_v61 = vpack.c.bf16 %v1322_v60, %v1322_v60 }
 0x2cc   : > { %1830 = vmatmul.mubr.bf16.vlgmr.msra.gmra.mxu0 %v1325_v61  ;;  %1871 = vmatmul.mubr.bf16.vlgmr.msra.gmra.mxu1 %v1325_v61 }
 0x38c   : > { %v1831_v9 = vpop.f32.mrf.mxu0  ;;  %v1872_v10 = vpop.f32.mrf.mxu1 }
 0x38d   : > { %v1832_v11 = vadd.f32 %v1831_v9, %v1589_v62  ;;  %v1873_v18 = vadd.f32 %v1872_v10, %v1630_v3 }
 0x38e   : > { %v1833_v13 = vpop.f32.mrf.mxu0  ;;  %v1874_v14 = vpop.f32.mrf.mxu1 }
 0x38f   : > { %v1901_v15 = vadd.f32 %v1884_v8, %v1832_v11  ;;  %v1834_v16 = vadd.f32 %v1833_v13, %v1591_v63  ;;  %v1903_v28 = vadd.f32 %v1892_v27, %v1873_v18  ;;  %v1875_v29 = vadd.f32 %v1874_v14, %v1632_v4 }
 0x390   : > { %v1835_v19 = vpop.f32.mrf.mxu0  ;;  %v1876_v21 = vpop.f32.mrf.mxu1 }
 0x391   : > { %v2554_v22 = vmul.f32 -1.442695, %v1901_v15  ;;  %v1902_v23 = vadd.f32 %v1888_v12, %v1834_v16  ;;  %v2556_v30 = vmul.f32 -1.442695, %v1903_v28  ;;  %v1904_v32 = vadd.f32 %v1896_v20, %v1875_v29 }
 0x392   : > { %v1836_v24 = vpop.f32.mrf.mxu0  ;;  %v1877_v25 = vpop.f32.mrf.mxu1 }
 0x393   : > { %2954 = vpow2.f32 %v2554_v22  ;;  %v2555_v26 = vmul.f32 -1.442695, %v1902_v23 }
 0x395   : > { %2956 = vpow2.f32 %v2555_v26 }
 0x396   : > { %2958 = vpow2.f32 %v2556_v30 }
 0x3a0   : > { %v2955_v31 = vpop.eup %2954 }
 0x3a1   : > { %v1914_v33 = vadd.f32 1.0, %v2955_v31 }
 0x3a2   : > { %v2957_v35 = vpop.eup %2956 }
 0x3a3   : > { %2960 = vrcp.f32 %v1914_v33  ;;  %v1915_v36 = vadd.f32 1.0, %v2957_v35  ;;  %v2959_v37 = vpop.eup %2958 }
 0x3a4   : > { %2962 = vtanh.f32 %v1904_v32  ;;  %v1916_v42 = vadd.f32 1.0, %v2959_v37 }
 0x3a5   : > { %2964 = vrcp.f32 %v1915_v36 }
 0x3a6   : > { %2966 = vrcp.f32 %v1916_v42 }
 0x3b0   : > { %v2961_v38 = vpop.eup %2960 }
 0x3b1   : > { %v2963_v41 = vpop.eup %2962 }
 0x3b2   : > { %v2965_v34 = vpop.eup %2964  ;;  %v1925_v44 = vmul.f32 %v2963_v41, %v2961_v38 }
 0x3b3   : > { %v1924_v43 = vmul.f32 %v2965_v34, %v1329_v39  ;;  %v2967_v40 = vpop.eup %2966 }
 0x3b5   : > { %v1926_v17 = vadd.f32 %v1925_v44, %v1924_v43 }
 0x3b7   : > { %2968 = vtanh.f32 %v1926_v17  ;;  %1932 = vst [vmem:[#allocation25 + $0x8] sm:$0xff] %v1926_v17 }
 0x3c4   : > { %v2969_v45 = vpop.eup %2968 }
 0x3c5   : > { %v1928_v46 = vmul.f32 %v2969_v45, %v2967_v40 }
 0x3c7   : > { %1930 = vst [vmem:[#allocation23 + $0x8] sm:$0xff] %v1928_v46  ;;  %v1933_v47 = vpack.c.bf16 %v1928_v46, %v1928_v46 }
 0x3c9   : > { %1934 = vst [vmem:[#allocation3] sm:$0xf] %v1933_v47 }
 0x3ca PF: > { %v2970_v48 = vld [vmem:[%s3923_s30 + $0x74] ss:$8 sps:$4 sm:$0xff]   ;;  %v2972_v49 = vld [vmem:[%s3923_s30 + $0x70] ss:$8 sps:$4 sm:$0xff]   ;;  %v3595_v50 = vmov 0   ;;  %s3596_s17 = smov [#allocation23]  }
 0x3cb   : > { %2076 = vmatprep.mubr.bf16.mxu0 %v3595_v50  ;;  %2044 = vmatprep.subr.bf16.mxu0 %v2970_v48  ;;  %v2973_v51 = vld [vmem:[%s3923_s30 + $0x64] ss:$8 sps:$4 sm:$0xff]   ;;  %v2975_v52 = vld [vmem:[%s3923_s30 + $0x60] ss:$8 sps:$4 sm:$0xff]   ;;  %v2976_v53 = vld [vmem:[%s3923_s30 + $0x54] ss:$8 sps:$4 sm:$0xff]  }
 0x3cc   : > { %2045 = vmatpush1.bf16.msra.mxu0 %v2972_v49  ;;  %v2978_v54 = vld [vmem:[%s3923_s30 + $0x50] ss:$8 sps:$4 sm:$0xff]   ;;  %v2979_v55 = vld [vmem:[%s3923_s30 + $0x44] ss:$8 sps:$4 sm:$0xff]   ;;  %v2981_v0 = vld [vmem:[%s3923_s30 + $0x40] ss:$8 sps:$4 sm:$0xff]  }
 0x3cd   : > { %2046 = vmatprep.subr.bf16.mxu0 %v2973_v51  ;;  %v2982_v56 = vld [vmem:[%s3923_s30 + $0x34] ss:$8 sps:$4 sm:$0xff]   ;;  %v2984_v57 = vld [vmem:[%s3923_s30 + $0x30] ss:$8 sps:$4 sm:$0xff]   ;;  %v2985_v58 = vld [vmem:[%s3923_s30 + $0x24] ss:$8 sps:$4 sm:$0xff]  }
 0x3ce   : > { %v2987_v59 = vld [vmem:[%s3923_s30 + $0x20] ss:$8 sps:$4 sm:$0xff]   ;;  %v2988_v60 = vld [vmem:[%s3923_s30 + $0x14] ss:$8 sps:$4 sm:$0xff]   ;;  %v2990_v61 = vld [vmem:[%s3923_s30 + $0x10] ss:$8 sps:$4 sm:$0xff]  }
 0x3cf   : > { %v2991_v62 = vld [vmem:[%s3923_s30 + $0x4] ss:$8 sps:$4 sm:$0xff]   ;;  %v2993_v63 = vld [vmem:[%s3923_s30] ss:$8 sps:$4 sm:$0xff]   ;;  %s2112_s21 = sshll.u32 %s3596_s17, 4  ;;  %p4267_p8 = scmp.eq.s32.totalorder %s3700_s23, 1  ;;  %s2113_s21 = int_to_ptr.vmem [resolvable:$true] %s2112_s21 }
 0x3d0   : > { %2047 = vmatpush1.bf16.msra.mxu0 %v2975_v52  ;;  %v1935_v1 = vld [vmem:[#allocation3] sm:$0xf]  ;;  %s3420_s3 = scalar_lea.vmem %s2113_s21, 256  ;;  %p3427_p13 = scmp.lt.s32.totalorder %s2113_s21, %s2113_s21 }
 0x3d1   : > { %2048 = vmatprep.subr.bf16.mxu0 %v2976_v53  ;;  %p3421_p6 = scmp.ne.s32.totalorder %s2113_s21, %s3420_s3  ;;  %p3428_p12 = scmp.lt.s32.totalorder %s3420_s3, %s3420_s3 }
 0x3d3   : > { %p3422_p9 = pnand %p3421_p6, %p4267_p8  ;;  %p3429_p11 = por %p3428_p12, %p3427_p13 }
 0x3d4   : > { %2049 = vmatpush1.bf16.msra.mxu0 %v2978_v54 }
 0x3d5   : > { %2050 = vmatprep.subr.bf16.mxu0 %v2979_v55  ;;  %p3423_p7 = pneg %p3422_p9 }
 0x3d7   : > { %p3430_p3 = pnand %p3429_p11, %p3423_p7 }
 0x3d8   : > { %2051 = vmatpush1.bf16.msra.mxu0 %v2981_v0 }
 0x3d9   : > { %2052 = vmatprep.subr.bf16.mxu0 %v2982_v56 }
 0x3dc   : > { %2053 = vmatpush1.bf16.msra.mxu0 %v2984_v57 }
 0x3dd   : > { %2054 = vmatprep.subr.bf16.mxu0 %v2985_v58 }
 0x3e0   : > { %2055 = vmatpush1.bf16.msra.mxu0 %v2987_v59 }
 0x3e1   : > { %2056 = vmatprep.subr.bf16.mxu0 %v2988_v60 }
 0x3e4   : > { %2057 = vmatpush1.bf16.msra.mxu0 %v2990_v61 }
 0x3e5   : > { %2058 = vmatprep.subr.bf16.mxu0 %v2991_v62 }
 0x3e8   : > { %2059 = vmatpush1.bf16.msra.mxu0 %v2993_v63 }
 0x3eb   : > { %2077 = vmatmul.mubr.bf16.vlgmr.msra.gmra.mxu0 %v1935_v1 }
 0x3ec   : > { %3433 = shalt.err (!%p3430_p3)
}
 0x3ed   : > { %s3597_s24 = smov 128   ;;  %s3598_s30 = smov 8  }
 0x3ee   : > { %p4268_p4 = pmov %p4267_p8  ;;  %s3599_s9 = smov [#allocation25]  }
 0x3ef   : > { %s2125_s25 = sshll.u32 %s3599_s9, 4  ;;  %s2126_s25 = int_to_ptr.vmem [resolvable:$true] %s2125_s25 }
 0x3f0   : > { %2627 = dma.vmem_to_hbm [thread:$0]  (%p4268_p4), %s2113_s21, 256, %s4193_s13, [#allocation24], %s3597_s24, %s3597_s24, %s3598_s30  }
 0x3f1   : > { %s3444_s4 = scalar_lea.vmem %s2126_s25, 256  ;;  %p4269_p5 = pmov %p4268_p4 }
 0x3f2   : > { %p3445_p1 = scmp.ne.s32.totalorder %s2126_s25, %s3444_s4  ;;  %p3451_p10 = scmp.lt.s32.totalorder %s2126_s25, %s2126_s25 }
 0x3f3   : > { %p3452_p6 = scmp.lt.s32.totalorder %s3444_s4, %s3444_s4 }
 0x3f4   : > { %p3446_p2 = pnand %p3445_p1, %p4269_p5 }
 0x3f5   : > { %p3453_p8 = por %p3452_p6, %p3451_p10 }
 0x3f6   : > { %p3447_p0 = pneg %p3446_p2 }
 0x3f8   : > { %p3454_p9 = pnand %p3453_p8, %p3447_p0 }
 0x3fa   : > { %3457 = shalt.err (!%p3454_p9)
}
 0x3fb   : > { %p4270_p7 = pmov %p4268_p4  ;;  %v1954_v2 = vlaneseq  ;;  %v1952_v5 = vld [vmem:[%s3931_s8] sm:$0x3]  ;;  %s4271_s12 = sld [smem:[#allocation63_spill]] }
 0x3fc   : > { %s2592_s11 = sshll.u32 %s3700_s23, 8  ;;  %s2102_s6 = sshll.u32 %s3933_s27, 4  ;;  %s4134_s6 = int_to_ptr.vmem [resolvable:$true] %s2102_s6 }
 0x3fd   : > { %2629 = dma.vmem_to_hbm [thread:$0]  (%p4270_p7), %s2126_s25, 256, %s4194_s14, [#allocation24], %s3597_s24, %s3597_s24, %s3598_s30   ;;  %v1955_v3 = vshrl.u32 %v1954_v2, 7 }
 0x3fe   : > { %s4272_s0 = sld [smem:[#allocation74_spill]]  ;;  %s2088_s8 = scalar_lea.sflag [#allocation9], %s3920_s15 }
 0x3ff   : > { %v1956_v4 = vsub.s32 0, %v1955_v3  ;;  %v1960_v6 = vsub.s32 1, %v1955_v3  ;;  %s3468_s17 = scalar_lea.vmem %s4134_s6, 256  ;;  %s3600_s21 = smov [#allocation22]  }
 0x400   : > { %p3469_p13 = scmp.ne.s32.totalorder %s4134_s6, %s3468_s17  ;;  %s3472_s3 = sshll.u32 %s3600_s21, 4  ;;  %s3473_s3 = int_to_ptr.vmem [resolvable:$false] %s3472_s3 }
 0x401   : > { %v1957_v7 = vrot.slane %v1952_v5, %v1956_v4  ;;  %v1961_v8 = vrot.slane %v1952_v5, %v1960_v6  ;;  %p4274_p12 = scmp.ne.s32.totalorder %s4271_s12, 0  ;;  %s3474_s24 = scalar_lea.vmem %s3473_s3, 512 }
 0x402   : > { %p3475_p4 = scmp.lt.s32.totalorder %s4134_s6, %s3473_s3  ;;  %p3476_p1 = scmp.lt.s32.totalorder %s3474_s24, %s3468_s17 }
 0x403   : > { %p3470_p11 = pnand %p3469_p13, %p4274_p12 }
 0x404   : > { %s4273_s29 = smov %s4272_s0  ;;  %s4132_s10 = scalar_lea.hbm %s4272_s0, %s2592_s11 }
 0x405   : > { %p3471_p3 = pneg %p3470_p11  ;;  %p3477_p5 = por %p3476_p1, %p3475_p4 }
 0x407   : > { %p3478_p2 = pnand %p3477_p5, %p3471_p3 }
 0x4ab   : > { %v2078_v9 = vpop.f32.mrf.mxu0 }
 0x4ac   : > { %v2079_v10 = vadd.f32 %v2078_v9, %v1957_v7 }
 0x4ad   : > { %v2080_v11 = vpop.f32.mrf.mxu0 }
 0x4ae   : > { %2085 = vst [vmem:[%s3933_s27] sm:$0xff] %v2079_v10  ;;  %v2081_v12 = vadd.f32 %v2080_v11, %v1961_v8 }
 0x4af   : > { %v2082_v13 = vpop.f32.mrf.mxu0 }
 0x4b0   : > { %2086 = vst [vmem:[%s3933_s27 + $0x8] sm:$0xff] %v2081_v12 }
 0x4b1   : > { %v2083_v14 = vpop.f32.mrf.mxu0 }
 0x4b2   : > { %3481 = shalt.err (!%p3478_p2)
}
 0x4b3   : > { %s3482_s27 = scalar_lea.hbm %s4132_s10, 256  ;;  %s3486_s5 = scalar_lea.hbm %s4273_s29, 512 }
 0x4b4   : > { %p3483_p0 = scmp.ne.s32.totalorder %s4132_s10, %s3482_s27  ;;  %p3487_p8 = scmp.lt.s32.totalorder %s4132_s10, %s4273_s29 }
 0x4b5   : > { %p3488_p9 = scmp.lt.s32.totalorder %s3486_s5, %s3482_s27 }
 0x4b6   : > { %p3484_p10 = pnand %p3483_p0, %p4274_p12 }
 0x4b7   : > { %p3489_p7 = por %p3488_p9, %p3487_p8 }
 0x4b8   : > { %p3485_p6 = pneg %p3484_p10 }
 0x4ba   : > { %p3490_p13 = pnand %p3489_p7, %p3485_p6 }
 0x4bc   : > { %3493 = shalt.err (!%p3490_p13)
}
 0x4bd   : > { %2625 = dma.vmem_to_hbm [thread:$0]  (%p4274_p12), %s4134_s6, 256, %s4132_s10, %s2088_s8  }
 0x4be   : > { %p4275_p11 = scmp.eq.s32.totalorder %s3700_s23, 1 }
 0x4c0   : > { %3549 = dma.done.wait (%p4275_p11), [#allocation24], 512   ;;  %p4276_p3 = pmov %p4275_p11 }
 0x4c2   : > { %3551 = vsyncadd (%p4276_p3), [#allocation24], 4294966784 }
 0x4c3 PF: > { %s4277_s25 = sld [smem:[#allocation60_spill]]  ;;  %p4280_p1 = scmp.ge.s32.totalorder %s3570_s20, 2 }
 0x4c4   : > { %s4278_s4 = sld [smem:[#allocation64_spill]] }
 0x4c9   : > { %s2148_s28 = sand.u32 1, %s4277_s25  }
 0x4ca   : > { %p4279_p4 = scmp.ne.s32.totalorder %s4278_s4, 0  ;;  %s2149_s16 = scalar_lea.sflag [#allocation9], %s2148_s28 }
 0x4cc   : > { %p2665_p5 = pnand %p4280_p1, %p4279_p4 }
 0x4ce   : > { %p2666_p2 = pneg %p2665_p5 }
 0x4d0   : > { %3553 = dma.done.wait (%p2666_p2), %s2149_s16, 256  }
 0x4d1   : > { %3555 = vsyncadd (%p2666_p2), %s2149_s16, 4294967040  ;;  %s4281_s20 = sld [smem:[#allocation61_spill]]  ;;  %s4283_s0 = smov %s3562_s18 }
 0x4d2   : > { %s4282_s12 = sld [smem:[#allocation62_spill]]  ;;  %s4284_s18 = smov %s3566_s19 }
 0x4d7   : > { %p39_p12 = scmp.ge.s32.totalorder %s4281_s20, 4  }
 0x4d8   : > { %s4285_s19 = smov %s4282_s12 }
 0x4d9   :  { %41 = sbr.rel (!%p39_p12) target bundleno = 27 (0x1b), region = 230 }
 0x4de   :  { %2154 = vsyncpa [#allocation8], 1 }
 0x4df   :  { %2156 = vsyncpa [#allocation8 + $0x1], 1 }
 0x4e0   :  { %2157 = vsyncpa [#allocation11], 1 }
 0x4e1   :  { %2158 = vsyncpa [#allocation14], 1 }
 0x4e2   :  { %2159 = vsyncpa [#allocation17], 1 }
 0x4e3   :  { %2160 = vsyncpa [#allocation20], 1 }
 0x4e4   :  { %2162 = vsyncpa [#allocation20 + $0x1], 1 }
 0x4e5   :  { %2163 = vsyncpa [#allocation9], 1 }
 0x4e6   :  { %2165 = vsyncpa [#allocation9 + $0x1], 1 }
 0x4e7   :  { %2166 = vsyncpa [#allocation24], 1 }
 0x4e8   :  { %2167 = vsyncmov [#allocation4] }
 0x4eb   :  { %s2168_s23 = vpop.sfrf %2167 }
 0x4ec   :  { %p2582_p0 = scmp.ne.s32.totalorder %s2168_s23, 0 }
 0x4ee   :  { %2172 = shalt.err (%p2582_p0)  }
 0x4ef   :  { %2174 = vsyncmov [#allocation4 + $0x1] }
 0x4f2   :  { %s2175_s11 = vpop.sfrf %2174 }
 0x4f3   :  { %p2583_p10 = scmp.ne.s32.totalorder %s2175_s11, 0 }
 0x4f5   :  { %2179 = shalt.err (%p2583_p10)  }
 0x4f6   :  { %2181 = vsyncmov [#allocation4 + $0x2] }
 0x4f9   :  { %s2182_s20 = vpop.sfrf %2181 }
 0x4fa   :  { %p2584_p6 = scmp.ne.s32.totalorder %s2182_s20, 0 }
 0x4fc   :  { %2186 = shalt.err (%p2584_p6)  }
 0x4fd   :  { %2188 = vsyncmov [#allocation4 + $0x3] }
 0x500   :  { %s2189_s1 = vpop.sfrf %2188 }
 0x501   :  { %p2585_p8 = scmp.ne.s32.totalorder %s2189_s1, 0 }
 0x503   :  { %2193 = shalt.err (%p2585_p8)  }
 0x504   :  { %2195 = vsyncmov [#allocation4 + $0x4] }
 0x507   :  { %s2196_s2 = vpop.sfrf %2195 }
 0x508   :  { %p2586_p9 = scmp.ne.s32.totalorder %s2196_s2, 0 }
 0x50a   :  { %2200 = shalt.err (%p2586_p9)  }
 0x50b   :  { %2202 = vsyncmov [#allocation4 + $0x5] }
 0x50e   :  { %s2203_s13 = vpop.sfrf %2202 }
 0x50f   :  { %p2587_p7 = scmp.ne.s32.totalorder %s2203_s13, 0 }
 0x511   :  { %2207 = shalt.err (%p2587_p7)  }
 0x512   :  { %2209 = vsyncmov [#allocation4 + $0x6] }
 0x515   :  { %s2210_s14 = vpop.sfrf %2209 }
 0x516   :  { %p2588_p13 = scmp.ne.s32.totalorder %s2210_s14, 0 }
 0x518   :  { %2214 = shalt.err (%p2588_p13)  }
 0x519   :  { %2216 = vsyncmov [#allocation4 + $0x7] }
 0x51c   :  { %s2217_s18 = vpop.sfrf %2216 }
 0x51d   :  { %p2589_p11 = scmp.ne.s32.totalorder %s2217_s18, 0 }
 0x51f   :  { %2221 = shalt.err (%p2589_p11)  }

</bundles_post_ra>
